<compile_context>
chip_gen: v6e
topology: v6e:2x2x1
jax: 0.10.0
libtpu: 0.0.40
codegen_flags: <defaults>
</compile_context>

<pallas_src>
import jax
import jax.numpy as jnp
import numpy as np
from jax import lax
from jax.experimental import pallas as pl
from jax.experimental.pallas import tpu as pltpu

INV_SCORE_SCALE = 1.0 / 0.12   # v5 = v4.div(0.12), folded into the key path


# ------------------------------------------------------------- fused kernel
def fused_conv_attention_kernel(x_ref, kw_ref, kb_ref, vw_ref, vb_ref,
                                o_ref, xp_ref):
    """One image: key/value 1x1 convs (padding=1, bias) + per-channel attention.

    x_ref  : (1, Cin, H, W)  VMEM  raw input image (one batch element)
    kw_ref : (CK, Cin)       SMEM  key-conv 1x1 weights
    kb_ref : (CK,)           SMEM  key-conv bias
    vw_ref : (CV, Cin)       SMEM  value-conv 1x1 weights
    vb_ref : (CV,)           SMEM  value-conv bias
    o_ref  : (1, CK, S, S)   VMEM  attention output (S = H + 2)
    xp_ref : (Cin, S, S)     VMEM  scratch: zero-padded input
    """
    _, cin, h, w = x_ref.shape
    ck = o_ref.shape[1]
    cv = vw_ref.shape[0]

    # ---- padding=1 of the 1x1 convs, done in VMEM (no XLA pad / HBM temp) ---
    xp_ref[...] = jnp.zeros_like(xp_ref)
    for ch in range(cin):
        xp_ref[ch, pl.ds(1, h), pl.ds(1, w)] = x_ref[0, ch]
    xp = [xp_ref[ch] for ch in range(cin)]              # Cin x (S, S) slabs

    # ---- value conv: CV distinct channel slabs (1x1 conv = scalar FMAs) -----
    v_slabs = []
    for d in range(cv):
        vc = xp[0] * vw_ref[d, 0]
        for ch in range(1, cin):
            vc = vc + xp[ch] * vw_ref[d, ch]
        v_slabs.append(vc + vb_ref[d])

    # ---- key conv + per-channel attention (value channel = key channel % CV)
    for c in range(ck):
        kc = xp[0] * (kw_ref[c, 0] * INV_SCORE_SCALE)
        for ch in range(1, cin):
            kc = kc + xp[ch] * (kw_ref[c, ch] * INV_SCORE_SCALE)
        kc = kc + kb_ref[c] * INV_SCORE_SCALE            # 1/0.12 folded into K
        vc = v_slabs[c % cv]

        # scores: K_c @ V_c^T  (contract the spatial-column axis)
        s = lax.dot_general(kc, vc, (((1,), (1,)), ((), ())),
                            preferred_element_type=jnp.float32)     # (S, S)
        m = jnp.max(s, axis=-1, keepdims=True)           # lane-axis reduction
        e = jnp.exp(s - m)
        denom = jnp.sum(e, axis=-1, keepdims=True)
        inv = pl.reciprocal(denom, approx=True)           # EUP slot
        inv = inv * (2.0 - denom * inv)                   # one NR step: f32-exact
        p = e * inv
        # dropout(p=0.1, training=False) is the identity.
        o_ref[0, c] = jnp.dot(p, vc, preferred_element_type=jnp.float32)


# ------------------------------------------------------------------ wrapper
@jax.jit
def model_forward(x1, key_w, key_b, val_w, val_b):
    n, cin, h, w = x1.shape
    s = h + 2                        # Conv2d(kernel=1, padding=1) -> spatial +2
    ck = key_w.shape[0]              # 8
    cv = val_w.shape[0]              # 4

    kw = key_w.reshape(ck, cin)      # 1x1 kernels -> plain (Cout, Cin)
    vw = val_w.reshape(cv, cin)

    flops = n * (2 * (ck + cv) * cin * s * s      # the two 1x1 convs
                 + 2 * ck * s * s * s             # scores K V^T
                 + 2 * ck * s * s * s             # P @ V
                 + 6 * ck * s * s)                # softmax elementwise
    cost = pl.CostEstimate(
        flops=flops,
        transcendentals=n * ck * s * s,
        bytes_accessed=4 * (x1.size + kw.size + key_b.size
                            + vw.size + val_b.size + n * ck * s * s))

    out = pl.pallas_call(
        fused_conv_attention_kernel,
        out_shape=jax.ShapeDtypeStruct((n, ck, s, s), jnp.float32),
        grid_spec=pltpu.PrefetchScalarGridSpec(
            num_scalar_prefetch=0,
            grid=(n,),
            in_specs=[
                pl.BlockSpec((1, cin, h, w), lambda b: (b, 0, 0, 0)),
                pl.BlockSpec(memory_space=pltpu.MemorySpace.SMEM),   # kw
                pl.BlockSpec(memory_space=pltpu.MemorySpace.SMEM),   # kb
                pl.BlockSpec(memory_space=pltpu.MemorySpace.SMEM),   # vw
                pl.BlockSpec(memory_space=pltpu.MemorySpace.SMEM),   # vb
            ],
            out_specs=pl.BlockSpec((1, ck, s, s), lambda b: (b, 0, 0, 0)),
            scratch_shapes=[pltpu.VMEM((cin, s, s), jnp.float32)],
        ),
        compiler_params=pltpu.CompilerParams(
            dimension_semantics=("parallel",)),
        cost_estimate=cost,
    )(x1, kw, key_b, vw, val_b)
    return out


# --------------------------------------------------------------- JAX reference
def reference(x1, key_w, key_b, val_w, val_b):
    hi = jax.lax.Precision.HIGHEST

    def conv(x, wgt, b):
        y = jnp.einsum("nchw,oc->nohw", x, wgt[:, :, 0, 0], precision=hi)
        y = jnp.pad(y, ((0, 0), (0, 0), (1, 1), (1, 1)))
        return y + b.reshape(1, -1, 1, 1)

    x2 = conv(x1, key_w, key_b)
    x3 = conv(x1, val_w, val_b)
    x3b = jnp.tile(x3, (1, x2.shape[1] // x3.shape[1], 1, 1))
    scores = jnp.einsum("ncij,nckj->ncik", x2, x3b, precision=hi) / 0.12
    p = jax.nn.softmax(scores, axis=-1)
    return jnp.einsum("ncik,nckj->ncij", p, x3b, precision=hi)


if __name__ == "__main__":
    key = jax.random.PRNGKey(0)
    k1, k2, k3, k4, k5 = jax.random.split(key, 5)

    # small shapes consistent with the module: N=1, Cin=3, spatial 16x16
    x1 = jax.random.normal(k1, (1, 3, 16, 16), dtype=jnp.float32)

    # deterministic parameters (shapes from __init__): 1x1 conv weights + biases
    key_w = jax.random.normal(k2, (8, 3, 1, 1), dtype=jnp.float32) * 0.2
    key_b = jax.random.normal(k3, (8,), dtype=jnp.float32) * 0.1
    val_w = jax.random.normal(k4, (4, 3, 1, 1), dtype=jnp.float32) * 0.2
    val_b = jax.random.normal(k5, (4,), dtype=jnp.float32) * 0.1

    v8 = jax.block_until_ready(model_forward(x1, key_w, key_b, val_w, val_b))
    ref = jax.block_until_ready(reference(x1, key_w, key_b, val_w, val_b))

    np.testing.assert_allclose(np.asarray(v8), np.asarray(ref),
                               rtol=2e-3, atol=2e-3)
    print("KERNEL_OK")
</pallas_src>

<mosaic_0001>
module attributes {stable_mosaic.version = 11 : i64} {
  func.func @fused_conv_attention_kernel(%arg0: i32, %arg1: memref<1x3x16x16xf32, #tpu.memory_space<vmem>>, %arg2: memref<8x3xf32, #tpu.memory_space<smem>>, %arg3: memref<8xf32, #tpu.memory_space<smem>>, %arg4: memref<4x3xf32, #tpu.memory_space<smem>>, %arg5: memref<4xf32, #tpu.memory_space<smem>>, %arg6: memref<1x8x18x18xf32, #tpu.memory_space<vmem>>, %arg7: memref<3x18x18xf32, #tpu.memory_space<vmem>>) attributes {dimension_semantics = [#tpu.dimension_semantics<parallel>], iteration_bounds = array<i64: 1>, scalar_prefetch = 0 : i64, scratch_operands = 1 : i64, tpu.core_type = #tpu.core_type<tc>, window_params = [{transform_indices = @transform_0, window_bounds = array<i64: 1, 3, 16, 16>}, {transform_indices = @transform_1, window_bounds = array<i64: 8, 3>}, {transform_indices = @transform_2, window_bounds = array<i64: 8>}, {transform_indices = @transform_3, window_bounds = array<i64: 4, 3>}, {transform_indices = @transform_4, window_bounds = array<i64: 4>}, {transform_indices = @transform_5, window_bounds = array<i64: 1, 8, 18, 18>}]} {
    %cst = arith.constant 0.000000e+00 : f32
    %0 = vector.broadcast %cst : f32 to vector<3x18x18xf32>
    %c0 = arith.constant 0 : index
    %c0_0 = arith.constant 0 : index
    %c0_1 = arith.constant 0 : index
    %1 = vector.load %arg7[%c0, %c0_0, %c0_1] : memref<3x18x18xf32, #tpu.memory_space<vmem>>, vector<3x18x18xf32>
    tpu.vector_store %arg7[%c0, %c0_0, %c0_1], %0 {strides = array<i32>} : memref<3x18x18xf32, #tpu.memory_space<vmem>>, vector<3x18x18xf32>,
    %c0_2 = arith.constant 0 : index
    %c0_3 = arith.constant 0 : index
    %c0_4 = arith.constant 0 : index
    %c0_5 = arith.constant 0 : index
    %2 = vector.load %arg1[%c0_2, %c0_3, %c0_4, %c0_5] : memref<1x3x16x16xf32, #tpu.memory_space<vmem>>, vector<1x1x16x16xf32>
    %3 = vector.shape_cast %2 : vector<1x1x16x16xf32> to vector<16x16xf32>
    %c0_6 = arith.constant 0 : index
    %c1 = arith.constant 1 : index
    %c1_7 = arith.constant 1 : index
    %4 = vector.load %arg7[%c0_6, %c1, %c1_7] : memref<3x18x18xf32, #tpu.memory_space<vmem>>, vector<1x16x16xf32>
    %5 = vector.shape_cast %4 : vector<1x16x16xf32> to vector<16x16xf32>
    %6 = vector.shape_cast %3 : vector<16x16xf32> to vector<1x16x16xf32>
    tpu.vector_store %arg7[%c0_6, %c1, %c1_7], %6 {strides = array<i32>} : memref<3x18x18xf32, #tpu.memory_space<vmem>>, vector<1x16x16xf32>,
    %c0_8 = arith.constant 0 : index
    %c1_9 = arith.constant 1 : index
    %c0_10 = arith.constant 0 : index
    %c0_11 = arith.constant 0 : index
    %7 = vector.load %arg1[%c0_8, %c1_9, %c0_10, %c0_11] : memref<1x3x16x16xf32, #tpu.memory_space<vmem>>, vector<1x1x16x16xf32>
    %8 = vector.shape_cast %7 : vector<1x1x16x16xf32> to vector<16x16xf32>
    %c1_12 = arith.constant 1 : index
    %c1_13 = arith.constant 1 : index
    %c1_14 = arith.constant 1 : index
    %9 = vector.load %arg7[%c1_12, %c1_13, %c1_14] : memref<3x18x18xf32, #tpu.memory_space<vmem>>, vector<1x16x16xf32>
    %10 = vector.shape_cast %9 : vector<1x16x16xf32> to vector<16x16xf32>
    %11 = vector.shape_cast %8 : vector<16x16xf32> to vector<1x16x16xf32>
    tpu.vector_store %arg7[%c1_12, %c1_13, %c1_14], %11 {strides = array<i32>} : memref<3x18x18xf32, #tpu.memory_space<vmem>>, vector<1x16x16xf32>,
    %c0_15 = arith.constant 0 : index
    %c2 = arith.constant 2 : index
    %c0_16 = arith.constant 0 : index
    %c0_17 = arith.constant 0 : index
    %12 = vector.load %arg1[%c0_15, %c2, %c0_16, %c0_17] : memref<1x3x16x16xf32, #tpu.memory_space<vmem>>, vector<1x1x16x16xf32>
    %13 = vector.shape_cast %12 : vector<1x1x16x16xf32> to vector<16x16xf32>
    %c2_18 = arith.constant 2 : index
    %c1_19 = arith.constant 1 : index
    %c1_20 = arith.constant 1 : index
    %14 = vector.load %arg7[%c2_18, %c1_19, %c1_20] : memref<3x18x18xf32, #tpu.memory_space<vmem>>, vector<1x16x16xf32>
    %15 = vector.shape_cast %14 : vector<1x16x16xf32> to vector<16x16xf32>
    %16 = vector.shape_cast %13 : vector<16x16xf32> to vector<1x16x16xf32>
    tpu.vector_store %arg7[%c2_18, %c1_19, %c1_20], %16 {strides = array<i32>} : memref<3x18x18xf32, #tpu.memory_space<vmem>>, vector<1x16x16xf32>,
    %c0_21 = arith.constant 0 : index
    %c0_22 = arith.constant 0 : index
    %c0_23 = arith.constant 0 : index
    %17 = vector.load %arg7[%c0_21, %c0_22, %c0_23] : memref<3x18x18xf32, #tpu.memory_space<vmem>>, vector<1x18x18xf32>
    %18 = vector.shape_cast %17 : vector<1x18x18xf32> to vector<18x18xf32>
    %c1_24 = arith.constant 1 : index
    %c0_25 = arith.constant 0 : index
    %c0_26 = arith.constant 0 : index
    %19 = vector.load %arg7[%c1_24, %c0_25, %c0_26] : memref<3x18x18xf32, #tpu.memory_space<vmem>>, vector<1x18x18xf32>
    %20 = vector.shape_cast %19 : vector<1x18x18xf32> to vector<18x18xf32>
    %c2_27 = arith.constant 2 : index
    %c0_28 = arith.constant 0 : index
    %c0_29 = arith.constant 0 : index
    %21 = vector.load %arg7[%c2_27, %c0_28, %c0_29] : memref<3x18x18xf32, #tpu.memory_space<vmem>>, vector<1x18x18xf32>
    %22 = vector.shape_cast %21 : vector<1x18x18xf32> to vector<18x18xf32>
    %c0_30 = arith.constant 0 : index
    %c0_31 = arith.constant 0 : index
    %23 = memref.load %arg4[%c0_30, %c0_31] : memref<4x3xf32, #tpu.memory_space<smem>>
    %24 = vector.broadcast %23 : f32 to vector<18x18xf32>
    %25 = arith.mulf %18, %24 : vector<18x18xf32>
    %c0_32 = arith.constant 0 : index
    %c1_33 = arith.constant 1 : index
    %26 = memref.load %arg4[%c0_32, %c1_33] : memref<4x3xf32, #tpu.memory_space<smem>>
    %27 = vector.broadcast %26 : f32 to vector<18x18xf32>
    %28 = arith.mulf %20, %27 : vector<18x18xf32>
    %29 = arith.addf %25, %28 : vector<18x18xf32>
    %c0_34 = arith.constant 0 : index
    %c2_35 = arith.constant 2 : index
    %30 = memref.load %arg4[%c0_34, %c2_35] : memref<4x3xf32, #tpu.memory_space<smem>>
    %31 = vector.broadcast %30 : f32 to vector<18x18xf32>
    %32 = arith.mulf %22, %31 : vector<18x18xf32>
    %33 = arith.addf %29, %32 : vector<18x18xf32>
    %c0_36 = arith.constant 0 : index
    %34 = memref.load %arg5[%c0_36] : memref<4xf32, #tpu.memory_space<smem>>
    %35 = vector.broadcast %34 : f32 to vector<18x18xf32>
    %36 = arith.addf %33, %35 : vector<18x18xf32>
    %c1_37 = arith.constant 1 : index
    %c0_38 = arith.constant 0 : index
    %37 = memref.load %arg4[%c1_37, %c0_38] : memref<4x3xf32, #tpu.memory_space<smem>>
    %38 = vector.broadcast %37 : f32 to vector<18x18xf32>
    %39 = arith.mulf %18, %38 : vector<18x18xf32>
    %c1_39 = arith.constant 1 : index
    %c1_40 = arith.constant 1 : index
    %40 = memref.load %arg4[%c1_39, %c1_40] : memref<4x3xf32, #tpu.memory_space<smem>>
    %41 = vector.broadcast %40 : f32 to vector<18x18xf32>
    %42 = arith.mulf %20, %41 : vector<18x18xf32>
    %43 = arith.addf %39, %42 : vector<18x18xf32>
    %c1_41 = arith.constant 1 : index
    %c2_42 = arith.constant 2 : index
    %44 = memref.load %arg4[%c1_41, %c2_42] : memref<4x3xf32, #tpu.memory_space<smem>>
    %45 = vector.broadcast %44 : f32 to vector<18x18xf32>
    %46 = arith.mulf %22, %45 : vector<18x18xf32>
    %47 = arith.addf %43, %46 : vector<18x18xf32>
    %c1_43 = arith.constant 1 : index
    %48 = memref.load %arg5[%c1_43] : memref<4xf32, #tpu.memory_space<smem>>
    %49 = vector.broadcast %48 : f32 to vector<18x18xf32>
    %50 = arith.addf %47, %49 : vector<18x18xf32>
    %c2_44 = arith.constant 2 : index
    %c0_45 = arith.constant 0 : index
    %51 = memref.load %arg4[%c2_44, %c0_45] : memref<4x3xf32, #tpu.memory_space<smem>>
    %52 = vector.broadcast %51 : f32 to vector<18x18xf32>
    %53 = arith.mulf %18, %52 : vector<18x18xf32>
    %c2_46 = arith.constant 2 : index
    %c1_47 = arith.constant 1 : index
    %54 = memref.load %arg4[%c2_46, %c1_47] : memref<4x3xf32, #tpu.memory_space<smem>>
    %55 = vector.broadcast %54 : f32 to vector<18x18xf32>
    %56 = arith.mulf %20, %55 : vector<18x18xf32>
    %57 = arith.addf %53, %56 : vector<18x18xf32>
    %c2_48 = arith.constant 2 : index
    %c2_49 = arith.constant 2 : index
    %58 = memref.load %arg4[%c2_48, %c2_49] : memref<4x3xf32, #tpu.memory_space<smem>>
    %59 = vector.broadcast %58 : f32 to vector<18x18xf32>
    %60 = arith.mulf %22, %59 : vector<18x18xf32>
    %61 = arith.addf %57, %60 : vector<18x18xf32>
    %c2_50 = arith.constant 2 : index
    %62 = memref.load %arg5[%c2_50] : memref<4xf32, #tpu.memory_space<smem>>
    %63 = vector.broadcast %62 : f32 to vector<18x18xf32>
    %64 = arith.addf %61, %63 : vector<18x18xf32>
    %c3 = arith.constant 3 : index
    %c0_51 = arith.constant 0 : index
    %65 = memref.load %arg4[%c3, %c0_51] : memref<4x3xf32, #tpu.memory_space<smem>>
    %66 = vector.broadcast %65 : f32 to vector<18x18xf32>
    %67 = arith.mulf %18, %66 : vector<18x18xf32>
    %c3_52 = arith.constant 3 : index
    %c1_53 = arith.constant 1 : index
    %68 = memref.load %arg4[%c3_52, %c1_53] : memref<4x3xf32, #tpu.memory_space<smem>>
    %69 = vector.broadcast %68 : f32 to vector<18x18xf32>
    %70 = arith.mulf %20, %69 : vector<18x18xf32>
    %71 = arith.addf %67, %70 : vector<18x18xf32>
    %c3_54 = arith.constant 3 : index
    %c2_55 = arith.constant 2 : index
    %72 = memref.load %arg4[%c3_54, %c2_55] : memref<4x3xf32, #tpu.memory_space<smem>>
    %73 = vector.broadcast %72 : f32 to vector<18x18xf32>
    %74 = arith.mulf %22, %73 : vector<18x18xf32>
    %75 = arith.addf %71, %74 : vector<18x18xf32>
    %c3_56 = arith.constant 3 : index
    %76 = memref.load %arg5[%c3_56] : memref<4xf32, #tpu.memory_space<smem>>
    %77 = vector.broadcast %76 : f32 to vector<18x18xf32>
    %78 = arith.addf %75, %77 : vector<18x18xf32>
    %c0_57 = arith.constant 0 : index
    %c0_58 = arith.constant 0 : index
    %79 = memref.load %arg2[%c0_57, %c0_58] : memref<8x3xf32, #tpu.memory_space<smem>>
    %cst_59 = arith.constant 8.33333301 : f32
    %80 = arith.mulf %79, %cst_59 : f32
    %81 = vector.broadcast %80 : f32 to vector<18x18xf32>
    %82 = arith.mulf %18, %81 : vector<18x18xf32>
    %c0_60 = arith.constant 0 : index
    %c1_61 = arith.constant 1 : index
    %83 = memref.load %arg2[%c0_60, %c1_61] : memref<8x3xf32, #tpu.memory_space<smem>>
    %cst_62 = arith.constant 8.33333301 : f32
    %84 = arith.mulf %83, %cst_62 : f32
    %85 = vector.broadcast %84 : f32 to vector<18x18xf32>
    %86 = arith.mulf %20, %85 : vector<18x18xf32>
    %87 = arith.addf %82, %86 : vector<18x18xf32>
    %c0_63 = arith.constant 0 : index
    %c2_64 = arith.constant 2 : index
    %88 = memref.load %arg2[%c0_63, %c2_64] : memref<8x3xf32, #tpu.memory_space<smem>>
    %cst_65 = arith.constant 8.33333301 : f32
    %89 = arith.mulf %88, %cst_65 : f32
    %90 = vector.broadcast %89 : f32 to vector<18x18xf32>
    %91 = arith.mulf %22, %90 : vector<18x18xf32>
    %92 = arith.addf %87, %91 : vector<18x18xf32>
    %c0_66 = arith.constant 0 : index
    %93 = memref.load %arg3[%c0_66] : memref<8xf32, #tpu.memory_space<smem>>
    %cst_67 = arith.constant 8.33333301 : f32
    %94 = arith.mulf %93, %cst_67 : f32
    %95 = vector.broadcast %94 : f32 to vector<18x18xf32>
    %96 = arith.addf %92, %95 : vector<18x18xf32>
    %cst_68 = arith.constant dense<0.000000e+00> : vector<18x18xf32>
    %97 = tpu.matmul %96, %36, %cst_68 {dimension_numbers = #tpu.dot_dimension_numbers<[1], [1], [0], [0], [0, 0, 1, 0], [], []>} : vector<18x18xf32>, vector<18x18xf32>, vector<18x18xf32> -> vector<18x18xf32>
    %cst_69 = arith.constant dense<0xFF800000> : vector<18xf32>
    %98 = vector.multi_reduction <maximumf>, %97, %cst_69 [1] : vector<18x18xf32> to vector<18xf32>
    %99 = vector.shape_cast %98 : vector<18xf32> to vector<18x1xf32>
    %100 = vector.broadcast %99 : vector<18x1xf32> to vector<18x18xf32>
    %101 = arith.subf %97, %100 : vector<18x18xf32>
    %102 = math.exp %101 : vector<18x18xf32>
    %cst_70 = arith.constant dense<0.000000e+00> : vector<18xf32>
    %103 = vector.multi_reduction <add>, %102, %cst_70 [1] : vector<18x18xf32> to vector<18xf32>
    %104 = vector.shape_cast %103 : vector<18xf32> to vector<18x1xf32>
    %105 = tpu.reciprocal %104 {approx = true} : vector<18x1xf32> -> vector<18x1xf32>
    %106 = arith.mulf %104, %105 : vector<18x1xf32>
    %cst_71 = arith.constant 2.000000e+00 : f32
    %107 = vector.broadcast %cst_71 : f32 to vector<18x1xf32>
    %108 = arith.subf %107, %106 : vector<18x1xf32>
    %109 = arith.mulf %105, %108 : vector<18x1xf32>
    %110 = vector.broadcast %109 : vector<18x1xf32> to vector<18x18xf32>
    %111 = arith.mulf %102, %110 : vector<18x18xf32>
    %cst_72 = arith.constant dense<0.000000e+00> : vector<18x18xf32>
    %112 = tpu.matmul %111, %36, %cst_72 {dimension_numbers = #tpu.dot_dimension_numbers<[1], [0], [0], [1], [0, 0, 1, 1], [], []>} : vector<18x18xf32>, vector<18x18xf32>, vector<18x18xf32> -> vector<18x18xf32>
    %c0_73 = arith.constant 0 : index
    %c0_74 = arith.constant 0 : index
    %c0_75 = arith.constant 0 : index
    %c0_76 = arith.constant 0 : index
    %113 = vector.load %arg6[%c0_73, %c0_74, %c0_75, %c0_76] : memref<1x8x18x18xf32, #tpu.memory_space<vmem>>, vector<1x1x18x18xf32>
    %114 = vector.shape_cast %113 : vector<1x1x18x18xf32> to vector<18x18xf32>
    %115 = vector.shape_cast %112 : vector<18x18xf32> to vector<1x1x18x18xf32>
    tpu.vector_store %arg6[%c0_73, %c0_74, %c0_75, %c0_76], %115 {strides = array<i32>} : memref<1x8x18x18xf32, #tpu.memory_space<vmem>>, vector<1x1x18x18xf32>,
    %c1_77 = arith.constant 1 : index
    %c0_78 = arith.constant 0 : index
    %116 = memref.load %arg2[%c1_77, %c0_78] : memref<8x3xf32, #tpu.memory_space<smem>>
    %cst_79 = arith.constant 8.33333301 : f32
    %117 = arith.mulf %116, %cst_79 : f32
    %118 = vector.broadcast %117 : f32 to vector<18x18xf32>
    %119 = arith.mulf %18, %118 : vector<18x18xf32>
    %c1_80 = arith.constant 1 : index
    %c1_81 = arith.constant 1 : index
    %120 = memref.load %arg2[%c1_80, %c1_81] : memref<8x3xf32, #tpu.memory_space<smem>>
    %cst_82 = arith.constant 8.33333301 : f32
    %121 = arith.mulf %120, %cst_82 : f32
    %122 = vector.broadcast %121 : f32 to vector<18x18xf32>
    %123 = arith.mulf %20, %122 : vector<18x18xf32>
    %124 = arith.addf %119, %123 : vector<18x18xf32>
    %c1_83 = arith.constant 1 : index
    %c2_84 = arith.constant 2 : index
    %125 = memref.load %arg2[%c1_83, %c2_84] : memref<8x3xf32, #tpu.memory_space<smem>>
    %cst_85 = arith.constant 8.33333301 : f32
    %126 = arith.mulf %125, %cst_85 : f32
    %127 = vector.broadcast %126 : f32 to vector<18x18xf32>
    %128 = arith.mulf %22, %127 : vector<18x18xf32>
    %129 = arith.addf %124, %128 : vector<18x18xf32>
    %c1_86 = arith.constant 1 : index
    %130 = memref.load %arg3[%c1_86] : memref<8xf32, #tpu.memory_space<smem>>
    %cst_87 = arith.constant 8.33333301 : f32
    %131 = arith.mulf %130, %cst_87 : f32
    %132 = vector.broadcast %131 : f32 to vector<18x18xf32>
    %133 = arith.addf %129, %132 : vector<18x18xf32>
    %cst_88 = arith.constant dense<0.000000e+00> : vector<18x18xf32>
    %134 = tpu.matmul %133, %50, %cst_88 {dimension_numbers = #tpu.dot_dimension_numbers<[1], [1], [0], [0], [0, 0, 1, 0], [], []>} : vector<18x18xf32>, vector<18x18xf32>, vector<18x18xf32> -> vector<18x18xf32>
    %cst_89 = arith.constant dense<0xFF800000> : vector<18xf32>
    %135 = vector.multi_reduction <maximumf>, %134, %cst_89 [1] : vector<18x18xf32> to vector<18xf32>
    %136 = vector.shape_cast %135 : vector<18xf32> to vector<18x1xf32>
    %137 = vector.broadcast %136 : vector<18x1xf32> to vector<18x18xf32>
    %138 = arith.subf %134, %137 : vector<18x18xf32>
    %139 = math.exp %138 : vector<18x18xf32>
    %cst_90 = arith.constant dense<0.000000e+00> : vector<18xf32>
    %140 = vector.multi_reduction <add>, %139, %cst_90 [1] : vector<18x18xf32> to vector<18xf32>
    %141 = vector.shape_cast %140 : vector<18xf32> to vector<18x1xf32>
    %142 = tpu.reciprocal %141 {approx = true} : vector<18x1xf32> -> vector<18x1xf32>
    %143 = arith.mulf %141, %142 : vector<18x1xf32>
    %cst_91 = arith.constant 2.000000e+00 : f32
    %144 = vector.broadcast %cst_91 : f32 to vector<18x1xf32>
    %145 = arith.subf %144, %143 : vector<18x1xf32>
    %146 = arith.mulf %142, %145 : vector<18x1xf32>
    %147 = vector.broadcast %146 : vector<18x1xf32> to vector<18x18xf32>
    %148 = arith.mulf %139, %147 : vector<18x18xf32>
    %cst_92 = arith.constant dense<0.000000e+00> : vector<18x18xf32>
    %149 = tpu.matmul %148, %50, %cst_92 {dimension_numbers = #tpu.dot_dimension_numbers<[1], [0], [0], [1], [0, 0, 1, 1], [], []>} : vector<18x18xf32>, vector<18x18xf32>, vector<18x18xf32> -> vector<18x18xf32>
    %c0_93 = arith.constant 0 : index
    %c1_94 = arith.constant 1 : index
    %c0_95 = arith.constant 0 : index
    %c0_96 = arith.constant 0 : index
    %150 = vector.load %arg6[%c0_93, %c1_94, %c0_95, %c0_96] : memref<1x8x18x18xf32, #tpu.memory_space<vmem>>, vector<1x1x18x18xf32>
    %151 = vector.shape_cast %150 : vector<1x1x18x18xf32> to vector<18x18xf32>
    %152 = vector.shape_cast %149 : vector<18x18xf32> to vector<1x1x18x18xf32>
    tpu.vector_store %arg6[%c0_93, %c1_94, %c0_95, %c0_96], %152 {strides = array<i32>} : memref<1x8x18x18xf32, #tpu.memory_space<vmem>>, vector<1x1x18x18xf32>,
    %c2_97 = arith.constant 2 : index
    %c0_98 = arith.constant 0 : index
    %153 = memref.load %arg2[%c2_97, %c0_98] : memref<8x3xf32, #tpu.memory_space<smem>>
    %cst_99 = arith.constant 8.33333301 : f32
    %154 = arith.mulf %153, %cst_99 : f32
    %155 = vector.broadcast %154 : f32 to vector<18x18xf32>
    %156 = arith.mulf %18, %155 : vector<18x18xf32>
    %c2_100 = arith.constant 2 : index
    %c1_101 = arith.constant 1 : index
    %157 = memref.load %arg2[%c2_100, %c1_101] : memref<8x3xf32, #tpu.memory_space<smem>>
    %cst_102 = arith.constant 8.33333301 : f32
    %158 = arith.mulf %157, %cst_102 : f32
    %159 = vector.broadcast %158 : f32 to vector<18x18xf32>
    %160 = arith.mulf %20, %159 : vector<18x18xf32>
    %161 = arith.addf %156, %160 : vector<18x18xf32>
    %c2_103 = arith.constant 2 : index
    %c2_104 = arith.constant 2 : index
    %162 = memref.load %arg2[%c2_103, %c2_104] : memref<8x3xf32, #tpu.memory_space<smem>>
    %cst_105 = arith.constant 8.33333301 : f32
    %163 = arith.mulf %162, %cst_105 : f32
    %164 = vector.broadcast %163 : f32 to vector<18x18xf32>
    %165 = arith.mulf %22, %164 : vector<18x18xf32>
    %166 = arith.addf %161, %165 : vector<18x18xf32>
    %c2_106 = arith.constant 2 : index
    %167 = memref.load %arg3[%c2_106] : memref<8xf32, #tpu.memory_space<smem>>
    %cst_107 = arith.constant 8.33333301 : f32
    %168 = arith.mulf %167, %cst_107 : f32
    %169 = vector.broadcast %168 : f32 to vector<18x18xf32>
    %170 = arith.addf %166, %169 : vector<18x18xf32>
    %cst_108 = arith.constant dense<0.000000e+00> : vector<18x18xf32>
    %171 = tpu.matmul %170, %64, %cst_108 {dimension_numbers = #tpu.dot_dimension_numbers<[1], [1], [0], [0], [0, 0, 1, 0], [], []>} : vector<18x18xf32>, vector<18x18xf32>, vector<18x18xf32> -> vector<18x18xf32>
    %cst_109 = arith.constant dense<0xFF800000> : vector<18xf32>
    %172 = vector.multi_reduction <maximumf>, %171, %cst_109 [1] : vector<18x18xf32> to vector<18xf32>
    %173 = vector.shape_cast %172 : vector<18xf32> to vector<18x1xf32>
    %174 = vector.broadcast %173 : vector<18x1xf32> to vector<18x18xf32>
    %175 = arith.subf %171, %174 : vector<18x18xf32>
    %176 = math.exp %175 : vector<18x18xf32>
    %cst_110 = arith.constant dense<0.000000e+00> : vector<18xf32>
    %177 = vector.multi_reduction <add>, %176, %cst_110 [1] : vector<18x18xf32> to vector<18xf32>
    %178 = vector.shape_cast %177 : vector<18xf32> to vector<18x1xf32>
    %179 = tpu.reciprocal %178 {approx = true} : vector<18x1xf32> -> vector<18x1xf32>
    %180 = arith.mulf %178, %179 : vector<18x1xf32>
    %cst_111 = arith.constant 2.000000e+00 : f32
    %181 = vector.broadcast %cst_111 : f32 to vector<18x1xf32>
    %182 = arith.subf %181, %180 : vector<18x1xf32>
    %183 = arith.mulf %179, %182 : vector<18x1xf32>
    %184 = vector.broadcast %183 : vector<18x1xf32> to vector<18x18xf32>
    %185 = arith.mulf %176, %184 : vector<18x18xf32>
    %cst_112 = arith.constant dense<0.000000e+00> : vector<18x18xf32>
    %186 = tpu.matmul %185, %64, %cst_112 {dimension_numbers = #tpu.dot_dimension_numbers<[1], [0], [0], [1], [0, 0, 1, 1], [], []>} : vector<18x18xf32>, vector<18x18xf32>, vector<18x18xf32> -> vector<18x18xf32>
    %c0_113 = arith.constant 0 : index
    %c2_114 = arith.constant 2 : index
    %c0_115 = arith.constant 0 : index
    %c0_116 = arith.constant 0 : index
    %187 = vector.load %arg6[%c0_113, %c2_114, %c0_115, %c0_116] : memref<1x8x18x18xf32, #tpu.memory_space<vmem>>, vector<1x1x18x18xf32>
    %188 = vector.shape_cast %187 : vector<1x1x18x18xf32> to vector<18x18xf32>
    %189 = vector.shape_cast %186 : vector<18x18xf32> to vector<1x1x18x18xf32>
    tpu.vector_store %arg6[%c0_113, %c2_114, %c0_115, %c0_116], %189 {strides = array<i32>} : memref<1x8x18x18xf32, #tpu.memory_space<vmem>>, vector<1x1x18x18xf32>,
    %c3_117 = arith.constant 3 : index
    %c0_118 = arith.constant 0 : index
    %190 = memref.load %arg2[%c3_117, %c0_118] : memref<8x3xf32, #tpu.memory_space<smem>>
    %cst_119 = arith.constant 8.33333301 : f32
    %191 = arith.mulf %190, %cst_119 : f32
    %192 = vector.broadcast %191 : f32 to vector<18x18xf32>
    %193 = arith.mulf %18, %192 : vector<18x18xf32>
    %c3_120 = arith.constant 3 : index
    %c1_121 = arith.constant 1 : index
    %194 = memref.load %arg2[%c3_120, %c1_121] : memref<8x3xf32, #tpu.memory_space<smem>>
    %cst_122 = arith.constant 8.33333301 : f32
    %195 = arith.mulf %194, %cst_122 : f32
    %196 = vector.broadcast %195 : f32 to vector<18x18xf32>
    %197 = arith.mulf %20, %196 : vector<18x18xf32>
    %198 = arith.addf %193, %197 : vector<18x18xf32>
    %c3_123 = arith.constant 3 : index
    %c2_124 = arith.constant 2 : index
    %199 = memref.load %arg2[%c3_123, %c2_124] : memref<8x3xf32, #tpu.memory_space<smem>>
    %cst_125 = arith.constant 8.33333301 : f32
    %200 = arith.mulf %199, %cst_125 : f32
    %201 = vector.broadcast %200 : f32 to vector<18x18xf32>
    %202 = arith.mulf %22, %201 : vector<18x18xf32>
    %203 = arith.addf %198, %202 : vector<18x18xf32>
    %c3_126 = arith.constant 3 : index
    %204 = memref.load %arg3[%c3_126] : memref<8xf32, #tpu.memory_space<smem>>
    %cst_127 = arith.constant 8.33333301 : f32
    %205 = arith.mulf %204, %cst_127 : f32
    %206 = vector.broadcast %205 : f32 to vector<18x18xf32>
    %207 = arith.addf %203, %206 : vector<18x18xf32>
    %cst_128 = arith.constant dense<0.000000e+00> : vector<18x18xf32>
    %208 = tpu.matmul %207, %78, %cst_128 {dimension_numbers = #tpu.dot_dimension_numbers<[1], [1], [0], [0], [0, 0, 1, 0], [], []>} : vector<18x18xf32>, vector<18x18xf32>, vector<18x18xf32> -> vector<18x18xf32>
    %cst_129 = arith.constant dense<0xFF800000> : vector<18xf32>
    %209 = vector.multi_reduction <maximumf>, %208, %cst_129 [1] : vector<18x18xf32> to vector<18xf32>
    %210 = vector.shape_cast %209 : vector<18xf32> to vector<18x1xf32>
    %211 = vector.broadcast %210 : vector<18x1xf32> to vector<18x18xf32>
    %212 = arith.subf %208, %211 : vector<18x18xf32>
    %213 = math.exp %212 : vector<18x18xf32>
    %cst_130 = arith.constant dense<0.000000e+00> : vector<18xf32>
    %214 = vector.multi_reduction <add>, %213, %cst_130 [1] : vector<18x18xf32> to vector<18xf32>
    %215 = vector.shape_cast %214 : vector<18xf32> to vector<18x1xf32>
    %216 = tpu.reciprocal %215 {approx = true} : vector<18x1xf32> -> vector<18x1xf32>
    %217 = arith.mulf %215, %216 : vector<18x1xf32>
    %cst_131 = arith.constant 2.000000e+00 : f32
    %218 = vector.broadcast %cst_131 : f32 to vector<18x1xf32>
    %219 = arith.subf %218, %217 : vector<18x1xf32>
    %220 = arith.mulf %216, %219 : vector<18x1xf32>
    %221 = vector.broadcast %220 : vector<18x1xf32> to vector<18x18xf32>
    %222 = arith.mulf %213, %221 : vector<18x18xf32>
    %cst_132 = arith.constant dense<0.000000e+00> : vector<18x18xf32>
    %223 = tpu.matmul %222, %78, %cst_132 {dimension_numbers = #tpu.dot_dimension_numbers<[1], [0], [0], [1], [0, 0, 1, 1], [], []>} : vector<18x18xf32>, vector<18x18xf32>, vector<18x18xf32> -> vector<18x18xf32>
    %c0_133 = arith.constant 0 : index
    %c3_134 = arith.constant 3 : index
    %c0_135 = arith.constant 0 : index
    %c0_136 = arith.constant 0 : index
    %224 = vector.load %arg6[%c0_133, %c3_134, %c0_135, %c0_136] : memref<1x8x18x18xf32, #tpu.memory_space<vmem>>, vector<1x1x18x18xf32>
    %225 = vector.shape_cast %224 : vector<1x1x18x18xf32> to vector<18x18xf32>
    %226 = vector.shape_cast %223 : vector<18x18xf32> to vector<1x1x18x18xf32>
    tpu.vector_store %arg6[%c0_133, %c3_134, %c0_135, %c0_136], %226 {strides = array<i32>} : memref<1x8x18x18xf32, #tpu.memory_space<vmem>>, vector<1x1x18x18xf32>,
    %c4 = arith.constant 4 : index
    %c0_137 = arith.constant 0 : index
    %227 = memref.load %arg2[%c4, %c0_137] : memref<8x3xf32, #tpu.memory_space<smem>>
    %cst_138 = arith.constant 8.33333301 : f32
    %228 = arith.mulf %227, %cst_138 : f32
    %229 = vector.broadcast %228 : f32 to vector<18x18xf32>
    %230 = arith.mulf %18, %229 : vector<18x18xf32>
    %c4_139 = arith.constant 4 : index
    %c1_140 = arith.constant 1 : index
    %231 = memref.load %arg2[%c4_139, %c1_140] : memref<8x3xf32, #tpu.memory_space<smem>>
    %cst_141 = arith.constant 8.33333301 : f32
    %232 = arith.mulf %231, %cst_141 : f32
    %233 = vector.broadcast %232 : f32 to vector<18x18xf32>
    %234 = arith.mulf %20, %233 : vector<18x18xf32>
    %235 = arith.addf %230, %234 : vector<18x18xf32>
    %c4_142 = arith.constant 4 : index
    %c2_143 = arith.constant 2 : index
    %236 = memref.load %arg2[%c4_142, %c2_143] : memref<8x3xf32, #tpu.memory_space<smem>>
    %cst_144 = arith.constant 8.33333301 : f32
    %237 = arith.mulf %236, %cst_144 : f32
    %238 = vector.broadcast %237 : f32 to vector<18x18xf32>
    %239 = arith.mulf %22, %238 : vector<18x18xf32>
    %240 = arith.addf %235, %239 : vector<18x18xf32>
    %c4_145 = arith.constant 4 : index
    %241 = memref.load %arg3[%c4_145] : memref<8xf32, #tpu.memory_space<smem>>
    %cst_146 = arith.constant 8.33333301 : f32
    %242 = arith.mulf %241, %cst_146 : f32
    %243 = vector.broadcast %242 : f32 to vector<18x18xf32>
    %244 = arith.addf %240, %243 : vector<18x18xf32>
    %cst_147 = arith.constant dense<0.000000e+00> : vector<18x18xf32>
    %245 = tpu.matmul %244, %36, %cst_147 {dimension_numbers = #tpu.dot_dimension_numbers<[1], [1], [0], [0], [0, 0, 1, 0], [], []>} : vector<18x18xf32>, vector<18x18xf32>, vector<18x18xf32> -> vector<18x18xf32>
    %cst_148 = arith.constant dense<0xFF800000> : vector<18xf32>
    %246 = vector.multi_reduction <maximumf>, %245, %cst_148 [1] : vector<18x18xf32> to vector<18xf32>
    %247 = vector.shape_cast %246 : vector<18xf32> to vector<18x1xf32>
    %248 = vector.broadcast %247 : vector<18x1xf32> to vector<18x18xf32>
    %249 = arith.subf %245, %248 : vector<18x18xf32>
    %250 = math.exp %249 : vector<18x18xf32>
    %cst_149 = arith.constant dense<0.000000e+00> : vector<18xf32>
    %251 = vector.multi_reduction <add>, %250, %cst_149 [1] : vector<18x18xf32> to vector<18xf32>
    %252 = vector.shape_cast %251 : vector<18xf32> to vector<18x1xf32>
    %253 = tpu.reciprocal %252 {approx = true} : vector<18x1xf32> -> vector<18x1xf32>
    %254 = arith.mulf %252, %253 : vector<18x1xf32>
    %cst_150 = arith.constant 2.000000e+00 : f32
    %255 = vector.broadcast %cst_150 : f32 to vector<18x1xf32>
    %256 = arith.subf %255, %254 : vector<18x1xf32>
    %257 = arith.mulf %253, %256 : vector<18x1xf32>
    %258 = vector.broadcast %257 : vector<18x1xf32> to vector<18x18xf32>
    %259 = arith.mulf %250, %258 : vector<18x18xf32>
    %cst_151 = arith.constant dense<0.000000e+00> : vector<18x18xf32>
    %260 = tpu.matmul %259, %36, %cst_151 {dimension_numbers = #tpu.dot_dimension_numbers<[1], [0], [0], [1], [0, 0, 1, 1], [], []>} : vector<18x18xf32>, vector<18x18xf32>, vector<18x18xf32> -> vector<18x18xf32>
    %c0_152 = arith.constant 0 : index
    %c4_153 = arith.constant 4 : index
    %c0_154 = arith.constant 0 : index
    %c0_155 = arith.constant 0 : index
    %261 = vector.load %arg6[%c0_152, %c4_153, %c0_154, %c0_155] : memref<1x8x18x18xf32, #tpu.memory_space<vmem>>, vector<1x1x18x18xf32>
    %262 = vector.shape_cast %261 : vector<1x1x18x18xf32> to vector<18x18xf32>
    %263 = vector.shape_cast %260 : vector<18x18xf32> to vector<1x1x18x18xf32>
    tpu.vector_store %arg6[%c0_152, %c4_153, %c0_154, %c0_155], %263 {strides = array<i32>} : memref<1x8x18x18xf32, #tpu.memory_space<vmem>>, vector<1x1x18x18xf32>,
    %c5 = arith.constant 5 : index
    %c0_156 = arith.constant 0 : index
    %264 = memref.load %arg2[%c5, %c0_156] : memref<8x3xf32, #tpu.memory_space<smem>>
    %cst_157 = arith.constant 8.33333301 : f32
    %265 = arith.mulf %264, %cst_157 : f32
    %266 = vector.broadcast %265 : f32 to vector<18x18xf32>
    %267 = arith.mulf %18, %266 : vector<18x18xf32>
    %c5_158 = arith.constant 5 : index
    %c1_159 = arith.constant 1 : index
    %268 = memref.load %arg2[%c5_158, %c1_159] : memref<8x3xf32, #tpu.memory_space<smem>>
    %cst_160 = arith.constant 8.33333301 : f32
    %269 = arith.mulf %268, %cst_160 : f32
    %270 = vector.broadcast %269 : f32 to vector<18x18xf32>
    %271 = arith.mulf %20, %270 : vector<18x18xf32>
    %272 = arith.addf %267, %271 : vector<18x18xf32>
    %c5_161 = arith.constant 5 : index
    %c2_162 = arith.constant 2 : index
    %273 = memref.load %arg2[%c5_161, %c2_162] : memref<8x3xf32, #tpu.memory_space<smem>>
    %cst_163 = arith.constant 8.33333301 : f32
    %274 = arith.mulf %273, %cst_163 : f32
    %275 = vector.broadcast %274 : f32 to vector<18x18xf32>
    %276 = arith.mulf %22, %275 : vector<18x18xf32>
    %277 = arith.addf %272, %276 : vector<18x18xf32>
    %c5_164 = arith.constant 5 : index
    %278 = memref.load %arg3[%c5_164] : memref<8xf32, #tpu.memory_space<smem>>
    %cst_165 = arith.constant 8.33333301 : f32
    %279 = arith.mulf %278, %cst_165 : f32
    %280 = vector.broadcast %279 : f32 to vector<18x18xf32>
    %281 = arith.addf %277, %280 : vector<18x18xf32>
    %cst_166 = arith.constant dense<0.000000e+00> : vector<18x18xf32>
    %282 = tpu.matmul %281, %50, %cst_166 {dimension_numbers = #tpu.dot_dimension_numbers<[1], [1], [0], [0], [0, 0, 1, 0], [], []>} : vector<18x18xf32>, vector<18x18xf32>, vector<18x18xf32> -> vector<18x18xf32>
    %cst_167 = arith.constant dense<0xFF800000> : vector<18xf32>
    %283 = vector.multi_reduction <maximumf>, %282, %cst_167 [1] : vector<18x18xf32> to vector<18xf32>
    %284 = vector.shape_cast %283 : vector<18xf32> to vector<18x1xf32>
    %285 = vector.broadcast %284 : vector<18x1xf32> to vector<18x18xf32>
    %286 = arith.subf %282, %285 : vector<18x18xf32>
    %287 = math.exp %286 : vector<18x18xf32>
    %cst_168 = arith.constant dense<0.000000e+00> : vector<18xf32>
    %288 = vector.multi_reduction <add>, %287, %cst_168 [1] : vector<18x18xf32> to vector<18xf32>
    %289 = vector.shape_cast %288 : vector<18xf32> to vector<18x1xf32>
    %290 = tpu.reciprocal %289 {approx = true} : vector<18x1xf32> -> vector<18x1xf32>
    %291 = arith.mulf %289, %290 : vector<18x1xf32>
    %cst_169 = arith.constant 2.000000e+00 : f32
    %292 = vector.broadcast %cst_169 : f32 to vector<18x1xf32>
    %293 = arith.subf %292, %291 : vector<18x1xf32>
    %294 = arith.mulf %290, %293 : vector<18x1xf32>
    %295 = vector.broadcast %294 : vector<18x1xf32> to vector<18x18xf32>
    %296 = arith.mulf %287, %295 : vector<18x18xf32>
    %cst_170 = arith.constant dense<0.000000e+00> : vector<18x18xf32>
    %297 = tpu.matmul %296, %50, %cst_170 {dimension_numbers = #tpu.dot_dimension_numbers<[1], [0], [0], [1], [0, 0, 1, 1], [], []>} : vector<18x18xf32>, vector<18x18xf32>, vector<18x18xf32> -> vector<18x18xf32>
    %c0_171 = arith.constant 0 : index
    %c5_172 = arith.constant 5 : index
    %c0_173 = arith.constant 0 : index
    %c0_174 = arith.constant 0 : index
    %298 = vector.load %arg6[%c0_171, %c5_172, %c0_173, %c0_174] : memref<1x8x18x18xf32, #tpu.memory_space<vmem>>, vector<1x1x18x18xf32>
    %299 = vector.shape_cast %298 : vector<1x1x18x18xf32> to vector<18x18xf32>
    %300 = vector.shape_cast %297 : vector<18x18xf32> to vector<1x1x18x18xf32>
    tpu.vector_store %arg6[%c0_171, %c5_172, %c0_173, %c0_174], %300 {strides = array<i32>} : memref<1x8x18x18xf32, #tpu.memory_space<vmem>>, vector<1x1x18x18xf32>,
    %c6 = arith.constant 6 : index
    %c0_175 = arith.constant 0 : index
    %301 = memref.load %arg2[%c6, %c0_175] : memref<8x3xf32, #tpu.memory_space<smem>>
    %cst_176 = arith.constant 8.33333301 : f32
    %302 = arith.mulf %301, %cst_176 : f32
    %303 = vector.broadcast %302 : f32 to vector<18x18xf32>
    %304 = arith.mulf %18, %303 : vector<18x18xf32>
    %c6_177 = arith.constant 6 : index
    %c1_178 = arith.constant 1 : index
    %305 = memref.load %arg2[%c6_177, %c1_178] : memref<8x3xf32, #tpu.memory_space<smem>>
    %cst_179 = arith.constant 8.33333301 : f32
    %306 = arith.mulf %305, %cst_179 : f32
    %307 = vector.broadcast %306 : f32 to vector<18x18xf32>
    %308 = arith.mulf %20, %307 : vector<18x18xf32>
    %309 = arith.addf %304, %308 : vector<18x18xf32>
    %c6_180 = arith.constant 6 : index
    %c2_181 = arith.constant 2 : index
    %310 = memref.load %arg2[%c6_180, %c2_181] : memref<8x3xf32, #tpu.memory_space<smem>>
    %cst_182 = arith.constant 8.33333301 : f32
    %311 = arith.mulf %310, %cst_182 : f32
    %312 = vector.broadcast %311 : f32 to vector<18x18xf32>
    %313 = arith.mulf %22, %312 : vector<18x18xf32>
    %314 = arith.addf %309, %313 : vector<18x18xf32>
    %c6_183 = arith.constant 6 : index
    %315 = memref.load %arg3[%c6_183] : memref<8xf32, #tpu.memory_space<smem>>
    %cst_184 = arith.constant 8.33333301 : f32
    %316 = arith.mulf %315, %cst_184 : f32
    %317 = vector.broadcast %316 : f32 to vector<18x18xf32>
    %318 = arith.addf %314, %317 : vector<18x18xf32>
    %cst_185 = arith.constant dense<0.000000e+00> : vector<18x18xf32>
    %319 = tpu.matmul %318, %64, %cst_185 {dimension_numbers = #tpu.dot_dimension_numbers<[1], [1], [0], [0], [0, 0, 1, 0], [], []>} : vector<18x18xf32>, vector<18x18xf32>, vector<18x18xf32> -> vector<18x18xf32>
    %cst_186 = arith.constant dense<0xFF800000> : vector<18xf32>
    %320 = vector.multi_reduction <maximumf>, %319, %cst_186 [1] : vector<18x18xf32> to vector<18xf32>
    %321 = vector.shape_cast %320 : vector<18xf32> to vector<18x1xf32>
    %322 = vector.broadcast %321 : vector<18x1xf32> to vector<18x18xf32>
    %323 = arith.subf %319, %322 : vector<18x18xf32>
    %324 = math.exp %323 : vector<18x18xf32>
    %cst_187 = arith.constant dense<0.000000e+00> : vector<18xf32>
    %325 = vector.multi_reduction <add>, %324, %cst_187 [1] : vector<18x18xf32> to vector<18xf32>
    %326 = vector.shape_cast %325 : vector<18xf32> to vector<18x1xf32>
    %327 = tpu.reciprocal %326 {approx = true} : vector<18x1xf32> -> vector<18x1xf32>
    %328 = arith.mulf %326, %327 : vector<18x1xf32>
    %cst_188 = arith.constant 2.000000e+00 : f32
    %329 = vector.broadcast %cst_188 : f32 to vector<18x1xf32>
    %330 = arith.subf %329, %328 : vector<18x1xf32>
    %331 = arith.mulf %327, %330 : vector<18x1xf32>
    %332 = vector.broadcast %331 : vector<18x1xf32> to vector<18x18xf32>
    %333 = arith.mulf %324, %332 : vector<18x18xf32>
    %cst_189 = arith.constant dense<0.000000e+00> : vector<18x18xf32>
    %334 = tpu.matmul %333, %64, %cst_189 {dimension_numbers = #tpu.dot_dimension_numbers<[1], [0], [0], [1], [0, 0, 1, 1], [], []>} : vector<18x18xf32>, vector<18x18xf32>, vector<18x18xf32> -> vector<18x18xf32>
    %c0_190 = arith.constant 0 : index
    %c6_191 = arith.constant 6 : index
    %c0_192 = arith.constant 0 : index
    %c0_193 = arith.constant 0 : index
    %335 = vector.load %arg6[%c0_190, %c6_191, %c0_192, %c0_193] : memref<1x8x18x18xf32, #tpu.memory_space<vmem>>, vector<1x1x18x18xf32>
    %336 = vector.shape_cast %335 : vector<1x1x18x18xf32> to vector<18x18xf32>
    %337 = vector.shape_cast %334 : vector<18x18xf32> to vector<1x1x18x18xf32>
    tpu.vector_store %arg6[%c0_190, %c6_191, %c0_192, %c0_193], %337 {strides = array<i32>} : memref<1x8x18x18xf32, #tpu.memory_space<vmem>>, vector<1x1x18x18xf32>,
    %c7 = arith.constant 7 : index
    %c0_194 = arith.constant 0 : index
    %338 = memref.load %arg2[%c7, %c0_194] : memref<8x3xf32, #tpu.memory_space<smem>>
    %cst_195 = arith.constant 8.33333301 : f32
    %339 = arith.mulf %338, %cst_195 : f32
    %340 = vector.broadcast %339 : f32 to vector<18x18xf32>
    %341 = arith.mulf %18, %340 : vector<18x18xf32>
    %c7_196 = arith.constant 7 : index
    %c1_197 = arith.constant 1 : index
    %342 = memref.load %arg2[%c7_196, %c1_197] : memref<8x3xf32, #tpu.memory_space<smem>>
    %cst_198 = arith.constant 8.33333301 : f32
    %343 = arith.mulf %342, %cst_198 : f32
    %344 = vector.broadcast %343 : f32 to vector<18x18xf32>
    %345 = arith.mulf %20, %344 : vector<18x18xf32>
    %346 = arith.addf %341, %345 : vector<18x18xf32>
    %c7_199 = arith.constant 7 : index
    %c2_200 = arith.constant 2 : index
    %347 = memref.load %arg2[%c7_199, %c2_200] : memref<8x3xf32, #tpu.memory_space<smem>>
    %cst_201 = arith.constant 8.33333301 : f32
    %348 = arith.mulf %347, %cst_201 : f32
    %349 = vector.broadcast %348 : f32 to vector<18x18xf32>
    %350 = arith.mulf %22, %349 : vector<18x18xf32>
    %351 = arith.addf %346, %350 : vector<18x18xf32>
    %c7_202 = arith.constant 7 : index
    %352 = memref.load %arg3[%c7_202] : memref<8xf32, #tpu.memory_space<smem>>
    %cst_203 = arith.constant 8.33333301 : f32
    %353 = arith.mulf %352, %cst_203 : f32
    %354 = vector.broadcast %353 : f32 to vector<18x18xf32>
    %355 = arith.addf %351, %354 : vector<18x18xf32>
    %cst_204 = arith.constant dense<0.000000e+00> : vector<18x18xf32>
    %356 = tpu.matmul %355, %78, %cst_204 {dimension_numbers = #tpu.dot_dimension_numbers<[1], [1], [0], [0], [0, 0, 1, 0], [], []>} : vector<18x18xf32>, vector<18x18xf32>, vector<18x18xf32> -> vector<18x18xf32>
    %cst_205 = arith.constant dense<0xFF800000> : vector<18xf32>
    %357 = vector.multi_reduction <maximumf>, %356, %cst_205 [1] : vector<18x18xf32> to vector<18xf32>
    %358 = vector.shape_cast %357 : vector<18xf32> to vector<18x1xf32>
    %359 = vector.broadcast %358 : vector<18x1xf32> to vector<18x18xf32>
    %360 = arith.subf %356, %359 : vector<18x18xf32>
    %361 = math.exp %360 : vector<18x18xf32>
    %cst_206 = arith.constant dense<0.000000e+00> : vector<18xf32>
    %362 = vector.multi_reduction <add>, %361, %cst_206 [1] : vector<18x18xf32> to vector<18xf32>
    %363 = vector.shape_cast %362 : vector<18xf32> to vector<18x1xf32>
    %364 = tpu.reciprocal %363 {approx = true} : vector<18x1xf32> -> vector<18x1xf32>
    %365 = arith.mulf %363, %364 : vector<18x1xf32>
    %cst_207 = arith.constant 2.000000e+00 : f32
    %366 = vector.broadcast %cst_207 : f32 to vector<18x1xf32>
    %367 = arith.subf %366, %365 : vector<18x1xf32>
    %368 = arith.mulf %364, %367 : vector<18x1xf32>
    %369 = vector.broadcast %368 : vector<18x1xf32> to vector<18x18xf32>
    %370 = arith.mulf %361, %369 : vector<18x18xf32>
    %cst_208 = arith.constant dense<0.000000e+00> : vector<18x18xf32>
    %371 = tpu.matmul %370, %78, %cst_208 {dimension_numbers = #tpu.dot_dimension_numbers<[1], [0], [0], [1], [0, 0, 1, 1], [], []>} : vector<18x18xf32>, vector<18x18xf32>, vector<18x18xf32> -> vector<18x18xf32>
    %c0_209 = arith.constant 0 : index
    %c7_210 = arith.constant 7 : index
    %c0_211 = arith.constant 0 : index
    %c0_212 = arith.constant 0 : index
    %372 = vector.load %arg6[%c0_209, %c7_210, %c0_211, %c0_212] : memref<1x8x18x18xf32, #tpu.memory_space<vmem>>, vector<1x1x18x18xf32>
    %373 = vector.shape_cast %372 : vector<1x1x18x18xf32> to vector<18x18xf32>
    %374 = vector.shape_cast %371 : vector<18x18xf32> to vector<1x1x18x18xf32>
    tpu.vector_store %arg6[%c0_209, %c7_210, %c0_211, %c0_212], %374 {strides = array<i32>} : memref<1x8x18x18xf32, #tpu.memory_space<vmem>>, vector<1x1x18x18xf32>,
    return
  }
  func.func @transform_0(%arg0: i32) -> (i32, i32, i32, i32) {
    %c0_i32 = arith.constant 0 : i32
    %c0_i32_0 = arith.constant 0 : i32
    %c0_i32_1 = arith.constant 0 : i32
    %c0_i32_2 = arith.constant 0 : i32
    return %arg0, %c0_i32, %c0_i32_0, %c0_i32_1 : i32, i32, i32, i32
  }
  func.func @transform_1(%arg0: i32) -> (i32, i32) {
    %c0_i32 = arith.constant 0 : i32
    %c0_i32_0 = arith.constant 0 : i32
    %c0_i32_1 = arith.constant 0 : i32
    return %c0_i32, %c0_i32_0 : i32, i32
  }
  func.func @transform_2(%arg0: i32) -> i32 {
    %c0_i32 = arith.constant 0 : i32
    %c0_i32_0 = arith.constant 0 : i32
    return %c0_i32 : i32
  }
  func.func @transform_3(%arg0: i32) -> (i32, i32) {
    %c0_i32 = arith.constant 0 : i32
    %c0_i32_0 = arith.constant 0 : i32
    %c0_i32_1 = arith.constant 0 : i32
    return %c0_i32, %c0_i32_0 : i32, i32
  }
  func.func @transform_4(%arg0: i32) -> i32 {
    %c0_i32 = arith.constant 0 : i32
    %c0_i32_0 = arith.constant 0 : i32
    return %c0_i32 : i32
  }
  func.func @transform_5(%arg0: i32) -> (i32, i32, i32, i32) {
    %c0_i32 = arith.constant 0 : i32
    %c0_i32_0 = arith.constant 0 : i32
    %c0_i32_1 = arith.constant 0 : i32
    %c0_i32_2 = arith.constant 0 : i32
    return %arg0, %c0_i32, %c0_i32_0, %c0_i32_1 : i32, i32, i32, i32
  }
}

</mosaic_0001>

<bundles_post_ra>
// kernel: model_forward.1
= control target key start
LH: loop header
LB: loop body
LE: loop exit
PB: predicated region body
PF: predicated region fallthrough
CT: control target
= control target key end

     0   :  { %10 = vsyncpa [#allocation4], 0  ;;  %s4142_s0 = inlined_call_operand.hbm [shape: f32[1,3,16,16], index: 0, kind: input, shape index: {}]   ;;  %s4143_s1 = inlined_call_operand.vmem [shape: f32[8,3], index: 1, kind: input, shape index: {}]   ;;  %s4144_s2 = inlined_call_operand.vmem [shape: f32[8], index: 2, kind: input, shape index: {}]   ;;  %s4145_s3 = inlined_call_operand.vmem [shape: f32[4,3], index: 3, kind: input, shape index: {}]   ;;  %s4146_s4 = inlined_call_operand.vmem [shape: f32[4], index: 4, kind: input, shape index: {}]   ;;  %s4147_s5 = inlined_call_operand.vmem [shape: f32[1,8,18,18], index: 5, kind: output, shape index: {}]  }
   0x1   :  { %11 = vsyncpa [#allocation5], 0 }
   0x2   :  { %12 = vsyncpa [#allocation8], 0  ;;  %s42_s20 = sshll.u32 %s4144_s2, 4  ;;  %s43_s20 = int_to_ptr.vmem [resolvable:$true] %s42_s20 }
   0x3   :  { %13 = vsyncpa [#allocation11], 0  ;;  %s2918_s21 = scalar_lea.vmem %s43_s20, 16  ;;  %p2923_p1 = scmp.lt.s32.totalorder %s43_s20, %s43_s20 }
   0x4   :  { %p2919_p0 = scmp.ne.s32.totalorder %s43_s20, %s2918_s21  ;;  %p2924_p2 = scmp.lt.s32.totalorder %s2918_s21, %s2918_s21 }
   0x6   :  { %p2925_p3 = por %p2924_p2, %p2923_p1 }
   0x8   :  { %p2926_p4 = pnand %p2925_p3, %p2919_p0 }
   0xa   :  { %2929 = shalt.err (!%p2926_p4)
}
   0xb   :  { %s2994_s22 = smov [#allocation7]   ;;  %s2995_s23 = smov [#allocation3]  }
   0xc   :  { %45 = dma.vmem_to_smem %s43_s20, 16, %s2994_s22, [#allocation8]  }
   0xd   :  { %s19_s24 = sshll.u32 %s2995_s23, 4  ;;  %s20_s24 = int_to_ptr.vmem [resolvable:$true] %s19_s24 }
   0xe   :  { %s2938_s25 = scalar_lea.vmem %s20_s24, 768  ;;  %p2943_p6 = scmp.lt.s32.totalorder %s20_s24, %s20_s24 }
   0xf   :  { %p2939_p5 = scmp.ne.s32.totalorder %s20_s24, %s2938_s25  ;;  %p2944_p7 = scmp.lt.s32.totalorder %s2938_s25, %s2938_s25 }
  0x11   :  { %p2945_p8 = por %p2944_p7, %p2943_p6 }
  0x13   :  { %p2946_p9 = pnand %p2945_p8, %p2939_p5 }
  0x15   :  { %2949 = shalt.err (!%p2946_p9)
}
  0x16   :  { %s2996_s2 = smov 128   ;;  %s2997_s26 = smov 8  }
  0x17   :  { %25 = dma.hbm_to_vmem [thread:$0]  %s4142_s0, 768, %s20_s24, [#allocation4], %s2996_s2, %s2996_s2, %s2997_s26  }
  0x18   :  { %s32_s6 = sshll.u32 %s4143_s1, 4  ;;  %s52_s9 = sshll.u32 %s4145_s3, 4  ;;  %s33_s6 = int_to_ptr.vmem [resolvable:$true] %s32_s6  ;;  %s53_s9 = int_to_ptr.vmem [resolvable:$true] %s52_s9 }
  0x19   :  { %s2950_s10 = scalar_lea.vmem %s33_s6, 128  ;;  %p2955_p11 = scmp.lt.s32.totalorder %s33_s6, %s33_s6 }
  0x1a   :  { %p2951_p10 = scmp.ne.s32.totalorder %s33_s6, %s2950_s10  ;;  %p2956_p12 = scmp.lt.s32.totalorder %s2950_s10, %s2950_s10 }
  0x1c   :  { %p2957_p13 = por %p2956_p12, %p2955_p11 }
  0x1e   :  { %p2958_p0 = pnand %p2957_p13, %p2951_p10 }
  0x20   :  { %2961 = shalt.err (!%p2958_p0)
}
  0x21   :  { %s2998_s11 = smov [#allocation6]   ;;  %s2962_s0 = scalar_lea.vmem %s53_s9, 64 }
  0x22   :  { %35 = dma.vmem_to_smem %s33_s6, 128, %s2998_s11, [#allocation5]  }
  0x23   :  { %p2963_p1 = scmp.ne.s32.totalorder %s53_s9, %s2962_s0  ;;  %p2967_p2 = scmp.lt.s32.totalorder %s53_s9, %s53_s9 }
  0x24   :  { %p2968_p3 = scmp.lt.s32.totalorder %s2962_s0, %s2962_s0 }
  0x26   :  { %p2969_p4 = por %p2968_p3, %p2967_p2 }
  0x28   :  { %p2970_p5 = pnand %p2969_p4, %p2963_p1 }
  0x2a   :  { %2973 = shalt.err (!%p2970_p5)
}
  0x2b   :  { %s2999_s1 = smov [#allocation9]   ;;  %s62_s13 = sshll.u32 %s4146_s4, 4  ;;  %s63_s13 = int_to_ptr.vmem [resolvable:$true] %s62_s13 }
  0x2c   :  { %55 = dma.vmem_to_smem %s53_s9, 64, %s2999_s1, [#allocation8]  }
  0x2d   :  { %s2974_s14 = scalar_lea.vmem %s63_s13, 16  ;;  %p2979_p7 = scmp.lt.s32.totalorder %s63_s13, %s63_s13 }
  0x2e   :  { %p2975_p6 = scmp.ne.s32.totalorder %s63_s13, %s2974_s14  ;;  %p2980_p8 = scmp.lt.s32.totalorder %s2974_s14, %s2974_s14 }
  0x30   :  { %p2981_p9 = por %p2980_p8, %p2979_p7 }
  0x32   :  { %p2982_p10 = pnand %p2981_p9, %p2975_p6 }
  0x34   :  { %2985 = shalt.err (!%p2982_p10)
}
  0x35   :  { %s3000_s15 = smov [#allocation10]  }
  0x36   :  { %65 = dma.vmem_to_smem %s63_s13, 16, %s3000_s15, [#allocation11]  }
  0x37   :  { %2986 = dma.done.wait [#allocation4], 768  }
  0x38   :  { %2987 = vsyncadd [#allocation4], 4294966528 }
  0x39   :  { %2988 = dma.done.wait [#allocation5], 128  }
  0x3a   :  { %2989 = vsyncadd [#allocation5], 4294967168 }
  0x3b   :  { %2990 = dma.done.wait [#allocation8], 80  }
  0x3c   :  { %2991 = vsyncadd [#allocation8], 4294967216 }
  0x3d   :  { %2992 = dma.done.wait [#allocation11], 16  }
  0x3e   :  { %2993 = vsyncadd [#allocation11], 4294967280 }
  0x3f   :  { %81 = sfence }
  0x40   :  { %v122_v0 = vld [vmem:[#allocation3 + $0x28] sm:$0xff]  ;;  %vm82_vm0 = vcmask 146432   ;;  %s3001_s4 = smov 1   ;;  %vm85_vm1 = vcmask 140288   ;;  %v108_v2 = vld [vmem:[#allocation3 + $0x18] sm:$0xff]  ;;  %v93_v3 = vld [vmem:[#allocation3] sm:$0xff] }
  0x41   :  { %v94_v1 = vld [vmem:[#allocation3 + $0x8] sm:$0xff]  ;;  %127 = vrot.lane.b32.xlu1 %v122_v0, %s3001_s4  ;;  %v3002_v4 = vmov 0.0   ;;  %v107_v5 = vld [vmem:[#allocation3 + $0x10] sm:$0xff]  ;;  %v121_v6 = vld [vmem:[#allocation3 + $0x20] sm:$0xff]  ;;  %vm3003_vm2 = vmmov 0   ;;  %s3073_s16 = sld [smem:[#allocation9]] }
  0x42   :  { %99 = vrot.lane.b32.xlu0 %v94_v1, %s3001_s4  ;;  %91 = vst.msk [vmem:[#allocation2 + $0x38] sm:$0xff] %vm82_vm0, %v3002_v4  ;;  %83 = vst.msk [vmem:[#allocation2] sm:$0xff] %vm82_vm0, %v3002_v4  ;;  %2572 = vmatprep.subr.mxu0 %v3002_v4  ;;  %s3075_s17 = sld [smem:[#allocation9 + $0x1]]  ;;  %vm103_vm3 = vcmask 138248   ;;  %vm426_vm4 = vcmask 1041408  }
  0x43   :  { %92 = vst.msk [vmem:[#allocation2 + $0x40] sm:$0x3] %vm85_vm1, %v3002_v4  ;;  %86 = vst.msk [vmem:[#allocation2 + $0x10] sm:$0x3] %vm85_vm1, %v3002_v4  ;;  %2587 = vmatprep.subr.mxu1 %v3002_v4  ;;  %2578 = vmatprep.mubr.msk.f32.mxu0 %vm3003_vm2, %v3002_v4  ;;  %s3077_s18 = sld [smem:[#allocation9 + $0x2]] }
  0x44   :  { %84 = vst.msk [vmem:[#allocation2 + $0x8] sm:$0xff] %vm82_vm0, %v3002_v4  ;;  %87 = vst.msk [vmem:[#allocation2 + $0x18] sm:$0xff] %vm82_vm0, %v3002_v4  ;;  %2593 = vmatprep.mubr.msk.f32.mxu1 %vm3003_vm2, %v3002_v4  ;;  %s3079_s19 = sld [smem:[#allocation10]] }
  0x45   :  { %88 = vst.msk [vmem:[#allocation2 + $0x20] sm:$0xff] %vm82_vm0, %v3002_v4  ;;  %90 = vst.msk [vmem:[#allocation2 + $0x30] sm:$0xff] %vm82_vm0, %v3002_v4  ;;  %97 = vrot.lane.b32.xlu1 %v93_v3, %s3001_s4  ;;  %s3081_s20 = sld [smem:[#allocation6]] }
  0x46   :  { %89 = vst.msk [vmem:[#allocation2 + $0x28] sm:$0x3] %vm85_vm1, %v3002_v4  ;;  %113 = vrot.lane.b32.xlu0 %v108_v2, %s3001_s4  ;;  %s3083_s21 = sld [smem:[#allocation6 + $0x1]] }
  0x47   :  { %s3085_s22 = sld [smem:[#allocation6 + $0x2]]  ;;  %v144_v11 = vstv %s3073_s16 }
  0x48   :  { %s3087_s23 = sld [smem:[#allocation7]]  ;;  %v149_v12 = vstv %s3075_s17 }
  0x49   :  { %125 = vrot.lane.b32.xlu1 %v121_v6, %s3001_s4  ;;  %s3089_s24 = sld [smem:[#allocation9 + $0x80]]  ;;  %v3129_v13 = vstv %s3077_s18 }
  0x4a   :  { %111 = vrot.lane.b32.xlu0 %v107_v5, %s3001_s4  ;;  %s3091_s25 = sld [smem:[#allocation9 + $0x81]]  ;;  %v3133_v14 = vstv %s3079_s19 }
  0x4b   :  { %s3093_s2 = sld [smem:[#allocation9 + $0x82]]  ;;  %s248_s6 = smul.f32 8.333333, %s3081_s20 }
  0x4c   :  { %s3095_s26 = sld [smem:[#allocation10 + $0x1]]  ;;  %s254_s8 = smul.f32 8.333333, %s3083_s21 }
  0x4d   :  { %s3097_s27 = sld [smem:[#allocation6 + $0x80]]  ;;  %s263_s10 = smul.f32 8.333333, %s3085_s22  ;;  %v249_v15 = vstv %s248_s6 }
  0x4e   :  { %s3099_s28 = sld [smem:[#allocation6 + $0x81]]  ;;  %s272_s0 = smul.f32 8.333333, %s3087_s23  ;;  %v3135_v16 = vstv %s254_s8 }
  0x4f   :  { %s3101_s29 = sld [smem:[#allocation6 + $0x82]]  ;;  %v3137_v17 = vstv %s263_s10  ;;  %v170_v23 = vstv %s3089_s24 }
  0x50   :  { %s3103_s30 = sld [smem:[#allocation6 + $0x100]]  ;;  %v3143_v22 = vstv %s272_s0  ;;  %v3147_v24 = vstv %s3091_s25 }
  0x51   :  { %s3106_s7 = sld [smem:[#allocation9 + $0x100]]  ;;  %v3150_v25 = vstv %s3093_s2 }
  0x52   :  { %s3109_s9 = sld [smem:[#allocation9 + $0x101]]  ;;  %v3155_v26 = vstv %s3095_s26 }
  0x53   :  { %s3114_s11 = sld [smem:[#allocation9 + $0x102]]  ;;  %s513_s3 = smul.f32 8.333333, %s3097_s27 }
  0x54   :  { %s3117_s1 = sld [smem:[#allocation9 + $0x180]]  ;;  %s519_s13 = smul.f32 8.333333, %s3099_s28 }
  0x55   :  { %s3120_s12 = sld [smem:[#allocation9 + $0x182]]  ;;  %s528_s14 = smul.f32 8.333333, %s3101_s29  ;;  %v3157_v27 = vstv %s513_s3 }
  0x56   :  { %s778_s15 = smul.f32 8.333333, %s3103_s30  ;;  %v3159_v28 = vstv %s519_s13  ;;  %s3163_s4 = sld [smem:[#allocation6 + $0x101]] }
  0x57   :  { %v3161_v29 = vstv %s528_s14  ;;  %v3166_v30 = vstv %s3106_s7  ;;  %s3176_s16 = sld [smem:[#allocation6 + $0x102]] }
  0x58   :  { %v3169_v31 = vstv %s3109_s9  ;;  %v3174_v33 = vstv %s778_s15  ;;  %s3232_s17 = sld [smem:[#allocation6 + $0x180]] }
  0x59   :  { %v3172_v32 = vstv %s3114_s11  ;;  %s3255_s19 = sld [smem:[#allocation9 + $0x181]] }
  0x5a   :  { %v3182_v36 = vstv %s3117_s1  ;;  %s3281_s21 = sld [smem:[#allocation6 + $0x181]] }
  0x5b   :  { %v3185_v37 = vstv %s3120_s12  ;;  %s3305_s23 = sld [smem:[#allocation6 + $0x182]] }
  0x5c   :  { %s784_s18 = smul.f32 8.333333, %s3163_s4  ;;  %s3318_s24 = sld [smem:[#allocation6 + $0x200]] }
  0x5d   :  { %s793_s20 = smul.f32 8.333333, %s3176_s16  ;;  %s3339_s25 = sld [smem:[#allocation6 + $0x201]] }
  0x5e   :  { %s1043_s22 = smul.f32 8.333333, %s3232_s17  ;;  %s3364_s26 = sld [smem:[#allocation6 + $0x202]] }
  0x5f   :  { %s3396_s29 = sld [smem:[#allocation6 + $0x280]] }
  0x60   :  { %s1049_s2 = smul.f32 8.333333, %s3281_s21  ;;  %s3406_s30 = sld [smem:[#allocation6 + $0x281]] }
  0x61   :  { %s1058_s27 = smul.f32 8.333333, %s3305_s23  ;;  %s3423_s7 = sld [smem:[#allocation6 + $0x282]] }
  0x62   :  { %s1308_s28 = smul.f32 8.333333, %s3318_s24  ;;  %s3433_s8 = sld [smem:[#allocation6 + $0x300]] }
  0x63   :  { %s1314_s6 = smul.f32 8.333333, %s3339_s25  ;;  %s3443_s10 = sld [smem:[#allocation6 + $0x301]] }
  0x64   :  { %s1323_s9 = smul.f32 8.333333, %s3364_s26  ;;  %s3451_s11 = sld [smem:[#allocation6 + $0x302]] }
  0x65   :  { %s1562_s0 = smul.f32 8.333333, %s3396_s29  ;;  %s3469_s1 = sld [smem:[#allocation6 + $0x380]] }
  0x66   :  { %s1568_s3 = smul.f32 8.333333, %s3406_s30  ;;  %s3476_s12 = sld [smem:[#allocation6 + $0x381]] }
  0x67   :  { %s3482_s13 = sld [smem:[#allocation6 + $0x382]]  ;;  %s1577_s14 = smul.f32 8.333333, %s3423_s7 }
  0x68   :  { %s1816_s15 = smul.f32 8.333333, %s3433_s8  ;;  %s2340_s21 = sld [smem:[#allocation10 + $0x2]] }
  0x69   :  { %s1822_s4 = smul.f32 8.333333, %s3443_s10  ;;  %s2377_s23 = sld [smem:[#allocation7 + $0x2]] }
  0x6a   :  { %s1831_s16 = smul.f32 8.333333, %s3451_s11  ;;  %s2344_s24 = sld [smem:[#allocation10 + $0x3]] }
  0x6b   :  { %s2070_s17 = smul.f32 8.333333, %s3469_s1  ;;  %s2428_s29 = sld [smem:[#allocation7 + $0x5]] }
  0x6c   :  { %s2462_s8 = sld [smem:[#allocation7 + $0x7]] }
  0x6f   :  { %s802_s25 = smul.f32 8.333333, %s2377_s23 }
  0x71   :  { %s1586_s30 = smul.f32 8.333333, %s2428_s29 }
  0xb3   :  { %v128_v7 = vpop.permute.xlu1 %127 }
  0xb4   :  { %v100_v8 = vpop.permute.xlu0 %99  ;;  %133 = vst.msk [vmem:[#allocation2 + $0x39] sm:$0xff] %vm103_vm3, %v128_v7 }
  0xb5   :  { %105 = vst.msk [vmem:[#allocation2 + $0x9] sm:$0xff] %vm103_vm3, %v100_v8 }
  0xb7   :  { %v98_v10 = vpop.permute.xlu1 %97 }
  0xb8   :  { %v114_v9 = vpop.permute.xlu0 %113  ;;  %104 = vst.msk [vmem:[#allocation2 + $0x1] sm:$0xff] %vm103_vm3, %v98_v10 }
  0xb9   :  { %119 = vst.msk [vmem:[#allocation2 + $0x21] sm:$0xff] %vm103_vm3, %v114_v9 }
  0xbb   :  { %v3139_v18 = vld [vmem:[#allocation2 + $0x40] sm:$0x3]  ;;  %v126_v21 = vpop.permute.xlu1 %125 }
  0xbc   :  { %v3141_v19 = vld [vmem:[#allocation2 + $0x10] sm:$0x3]  ;;  %v112_v20 = vpop.permute.xlu0 %111  ;;  %132 = vst.msk [vmem:[#allocation2 + $0x31] sm:$0xff] %vm103_vm3, %v126_v21  ;;  %v160_v35 = vmul.f32 %v3129_v13, %v3139_v18  ;;  %v186_v42 = vmul.f32 %v3150_v25, %v3139_v18  ;;  %v3201_v44 = vmul.f32 %v3137_v17, %v3139_v18  ;;  %v3210_v47 = vmul.f32 %v3172_v32, %v3139_v18 }
  0xbd   :  { %118 = vst.msk [vmem:[#allocation2 + $0x19] sm:$0xff] %vm103_vm3, %v112_v20  ;;  %v147_v34 = vmul.f32 %v144_v11, %v3141_v19  ;;  %v173_v41 = vmul.f32 %v170_v23, %v3141_v19  ;;  %v3197_v43 = vmul.f32 %v249_v15, %v3141_v19  ;;  %v3206_v46 = vmul.f32 %v3166_v30, %v3141_v19 }
  0xbe   :  { %v3214_v48 = vmul.f32 %v3157_v27, %v3141_v19  ;;  %v3218_v49 = vmul.f32 %v3161_v29, %v3139_v18  ;;  %v3222_v50 = vmul.f32 %v3182_v36, %v3141_v19  ;;  %v3226_v51 = vmul.f32 %v3185_v37, %v3139_v18 }
  0xbf   :  { %v3189_v39 = vld [vmem:[#allocation2] sm:$0xff]  ;;  %v3191_v40 = vld [vmem:[#allocation2 + $0x8] sm:$0xff]  ;;  %v3230_v52 = vmul.f32 %v3174_v33, %v3141_v19 }
  0xc0   :  { %v3187_v38 = vld [vmem:[#allocation2 + $0x28] sm:$0x3]  ;;  %v146_v54 = vmul.f32 %v144_v11, %v3191_v40  ;;  %v145_v55 = vmul.f32 %v144_v11, %v3189_v39  ;;  %v250_v56 = vmul.f32 %v249_v15, %v3189_v39  ;;  %v172_v61 = vmul.f32 %v170_v23, %v3191_v40 }
  0xc1   :  { %v152_v45 = vmul.f32 %v149_v12, %v3187_v38  ;;  %v178_v60 = vmul.f32 %v3147_v24, %v3187_v38  ;;  %v251_v62 = vmul.f32 %v249_v15, %v3191_v40  ;;  %v171_v63 = vmul.f32 %v170_v23, %v3189_v39 }
  0xc2   :  { %v258_v9 = vmul.f32 %v3135_v16, %v3187_v38  ;;  %v515_v23 = vmul.f32 %v3157_v27, %v3189_v39 }
  0xc3   :  { %v155_v53 = vadd.f32 %v152_v45, %v147_v34  ;;  %v3241_v59 = vld [vmem:[#allocation2 + $0x30] sm:$0xff]  ;;  %v3248_v0 = vld [vmem:[#allocation2 + $0x38] sm:$0xff] }
  0xc4   :  { %v3237_v57 = vld [vmem:[#allocation2 + $0x18] sm:$0xff]  ;;  %v3239_v58 = vld [vmem:[#allocation2 + $0x20] sm:$0xff]  ;;  %v158_v5 = vmul.f32 %v3129_v13, %v3241_v59  ;;  %v159_v6 = vmul.f32 %v3129_v13, %v3248_v0  ;;  %v265_v8 = vmul.f32 %v3137_v17, %v3241_v59  ;;  %v181_v13 = vadd.f32 %v178_v60, %v173_v41 }
  0xc5   :  { %v163_v1 = vadd.f32 %v160_v35, %v155_v53  ;;  %v151_v2 = vmul.f32 %v149_v12, %v3239_v58  ;;  %v150_v3 = vmul.f32 %v149_v12, %v3237_v57  ;;  %v256_v7 = vmul.f32 %v3135_v16, %v3237_v57 }
  0xc6   :  { %v177_v15 = vmul.f32 %v3147_v24, %v3239_v58  ;;  %v257_v21 = vmul.f32 %v3135_v16, %v3239_v58  ;;  %v3279_v53 = vstv %s784_s18  ;;  %v204_v41 = vmul.f32 %v3169_v31, %v3187_v38  ;;  %s2076_s18 = smul.f32 8.333333, %s3476_s12 }
  0xc7   :  { %v3267_v10 = vadd.f32 %v3133_v14, %v163_v1  ;;  %v154_v11 = vadd.f32 %v151_v2, %v146_v54  ;;  %v153_v12 = vadd.f32 %v150_v3, %v145_v55  ;;  %v259_v20 = vadd.f32 %v256_v7, %v250_v56 }
  0xc8   :  { %v180_v45 = vadd.f32 %v177_v15, %v172_v61  ;;  %v516_v54 = vmul.f32 %v3157_v27, %v3191_v40  ;;  %v3289_v55 = vstv %s793_s20  ;;  %v185_v60 = vmul.f32 %v3150_v25, %v3248_v0  ;;  %s2360_s20 = sld [smem:[#allocation7 + $0x1]] }
  0xc9   :  { %2573 = vmatpush3.xpose.msk.msra.mxu0 %vm82_vm0, %v3267_v10  ;;  %2588 = vmatpush3.msk.msra.mxu1 %vm426_vm4, %v3267_v10  ;;  %v162_v34 = vadd.f32 %v159_v6, %v154_v11  ;;  %v161_v35 = vadd.f32 %v158_v5, %v153_v12  ;;  %v268_v16 = vadd.f32 %v265_v8, %v259_v20  ;;  %v3327_v8 = vstv %s1043_s22 }
  0xca   :  { %2574 = vmatprep.subr.mxu0 %v3002_v4  ;;  %2589 = vmatprep.subr.mxu1 %v3002_v4  ;;  %v176_v61 = vmul.f32 %v3147_v24, %v3237_v57  ;;  %v198_v1 = vmul.f32 %v3166_v30, %v3191_v40  ;;  %v189_v2 = vadd.f32 %v186_v42, %v181_v13 }
  0xcb   :  { %v3293_v56 = vadd.f32 %v3133_v14, %v162_v34  ;;  %v260_v3 = vadd.f32 %v257_v21, %v251_v62  ;;  %v266_v27 = vmul.f32 %v3137_v17, %v3248_v0  ;;  %v523_v5 = vmul.f32 %v3159_v28, %v3187_v38 }
  0xcc   :  { %v3311_v24 = vadd.f32 %v3133_v14, %v161_v35  ;;  %v188_v6 = vadd.f32 %v185_v60, %v180_v45  ;;  %v521_v42 = vmul.f32 %v3159_v28, %v3237_v57  ;;  %v3316_v62 = vstv %s3255_s19  ;;  %s2085_s19 = smul.f32 8.333333, %s3482_s13 }
  0xcd   :  { %2575 = vmatpush3.xpose.msk.msra.mxu0 %vm82_vm0, %v3293_v56  ;;  %2590 = vmatpush3.msra.mxu1 %v3293_v56  ;;  %v274_v17 = vadd.f32 %v3143_v22, %v268_v16  ;;  %v184_v7 = vmul.f32 %v3150_v25, %v3241_v59  ;;  %v530_v14 = vmul.f32 %v3161_v29, %v3241_v59 }
  0xce   :  { %2591 = vmatprep.subr.mxu1 %v3002_v4  ;;  %2576 = vmatprep.subr.mxu0 %v3002_v4  ;;  %v179_v11 = vadd.f32 %v176_v61, %v171_v63  ;;  %v524_v12 = vadd.f32 %v521_v42, %v515_v23  ;;  %v207_v15 = vadd.f32 %v204_v41, %v3206_v46  ;;  %s537_s22 = smul.f32 8.333333, %s2360_s20 }
  0xcf   :  { %2592 = vmatpush3.msra.mxu1 %v3311_v24  ;;  %v522_v20 = vmul.f32 %v3159_v28, %v3239_v58  ;;  %v269_v13 = vadd.f32 %v266_v27, %v260_v3  ;;  %v261_v21 = vadd.f32 %v258_v9, %v3197_v43  ;;  %v531_v25 = vmul.f32 %v3161_v29, %v3248_v0 }
  0xd0   :  { %2602 = vmatprep.subr.mxu1 %v3002_v4  ;;  %v203_v34 = vmul.f32 %v3169_v31, %v3239_v58  ;;  %v3343_v46 = vadd.f32 %v530_v14, %v524_v12  ;;  %v3346_v28 = vadd.f32 %v3210_v47, %v207_v15  ;;  %v211_v43 = vmul.f32 %v3172_v32, %v3248_v0 }
  0xd1   :  { %2577 = vmatpush3.xpose.msk.msra.mxu0 %vm82_vm0, %v3311_v24  ;;  %v525_v63 = vadd.f32 %v522_v20, %v516_v54  ;;  %v526_v9 = vadd.f32 %v523_v5, %v3214_v48  ;;  %v197_v23 = vmul.f32 %v3166_v30, %v3189_v39  ;;  %v202_v35 = vmul.f32 %v3169_v31, %v3237_v57 }
  0xd2   :  { %2617 = vmatprep.subr.mxu0 %v3002_v4  ;;  %v206_v29 = vadd.f32 %v203_v34, %v198_v1  ;;  %v3358_v47 = vadd.f32 %v3155_v26, %v189_v2  ;;  %v187_v45 = vadd.f32 %v184_v7, %v179_v11  ;;  %v210_v41 = vmul.f32 %v3172_v32, %v3241_v59 }
  0xd3   :  { %v3360_v16 = vadd.f32 %v531_v25, %v525_v63  ;;  %v3368_v48 = vadd.f32 %v3155_v26, %v188_v6  ;;  %v3373_v31 = vadd.f32 %v3218_v49, %v526_v9  ;;  %v205_v54 = vadd.f32 %v202_v35, %v197_v23 }
  0xd4   :  { %2579 = vmatmul.mubr.msk.f32.vlgmr.msra.gmra.mxu0 %vm82_vm0, %v274_v17  ;;  %v3370_v30 = vadd.f32 %v211_v43, %v206_v29  ;;  %v780_v32 = vmul.f32 %v3174_v33, %v3189_v39  ;;  %v786_v60 = vmul.f32 %v3279_v53, %v3237_v57  ;;  %v795_v61 = vmul.f32 %v3289_v55, %v3241_v59 }
  0xd5   :  { %2618 = vmatpush3.msk.msra.mxu0 %vm426_vm4, %v3358_v47  ;;  %2581 = vmatprep.mubr.msk.f32.mxu0 %vm3003_vm2, %v3002_v4  ;;  %v3386_v1 = vstv %s1049_s2  ;;  %v275_v49 = vadd.f32 %v3143_v22, %v269_v13  ;;  %v270_v2 = vadd.f32 %v3201_v44, %v261_v21  ;;  %v3392_v3 = vadd.f32 %v210_v41, %v205_v54  ;;  %s2394_s2 = sld [smem:[#allocation7 + $0x3]] }
  0xd6   :  { %2619 = vmatprep.subr.mxu0 %v3002_v4  ;;  %v230_v27 = vmul.f32 %v3316_v62, %v3187_v38  ;;  %v3400_v5 = vadd.f32 %v3155_v26, %v187_v45  ;;  %v789_v6 = vadd.f32 %v786_v60, %v780_v32  ;;  %v781_v42 = vmul.f32 %v3174_v33, %v3191_v40 }
  0xd7   :  { %2620 = vmatpush3.msra.mxu0 %v3368_v48  ;;  %v787_v44 = vmul.f32 %v3279_v53, %v3239_v58  ;;  %v796_v7 = vmul.f32 %v3289_v55, %v3248_v0  ;;  %v224_v26 = vmul.f32 %v3182_v36, %v3191_v40  ;;  %v1059_v14 = vstv %s1058_s27  ;;  %s2411_s27 = sld [smem:[#allocation7 + $0x4]] }
  0xd8   :  { %2582 = vmatmul.mubr.msk.f32.gmra.mxu0 %vm82_vm0, %v275_v49  ;;  %2621 = vmatprep.subr.mxu0 %v3002_v4  ;;  %v233_v17 = vadd.f32 %v230_v27, %v3222_v50  ;;  %v3419_v33 = vadd.f32 %v795_v61, %v789_v6  ;;  %v229_v50 = vmul.f32 %v3316_v62, %v3239_v58  ;;  %v1309_v12 = vstv %s1308_s28 }
  0xd9   :  { %2622 = vmatpush3.msra.mxu0 %v3400_v5  ;;  %2584 = vmatprep.mubr.msk.f32.mxu0 %vm3003_vm2, %v3002_v4  ;;  %v790_v11 = vadd.f32 %v787_v44, %v781_v42  ;;  %v276_v15 = vadd.f32 %v3143_v22, %v270_v2  ;;  %v237_v13 = vmul.f32 %v3185_v37, %v3248_v0  ;;  %v1315_v29 = vstv %s1314_s6  ;;  %s2445_s6 = sld [smem:[#allocation7 + $0x6]] }
  0xda   :  { %v3427_v20 = vadd.f32 %v3226_v51, %v233_v17  ;;  %v788_v21 = vmul.f32 %v3279_v53, %v3187_v38  ;;  %2647 = vmatprep.subr.mxu0 %v3002_v4  ;;  %v232_v34 = vadd.f32 %v229_v50, %v224_v26  ;;  %v223_v63 = vmul.f32 %v3182_v36, %v3189_v39 }
  0xdb   :  { %v3436_v25 = vadd.f32 %v796_v7, %v790_v11  ;;  %v228_v22 = vmul.f32 %v3316_v62, %v3237_v57  ;;  %v797_v53 = vmul.f32 %v3289_v55, %v3139_v18  ;;  %v236_v43 = vmul.f32 %v3185_v37, %v3241_v59  ;;  %s1067_s26 = smul.f32 8.333333, %s2394_s2 }
  0xdc   :  { %2585 = vmatmul.mubr.msk.f32.gmra.mxu0 %vm82_vm0, %v276_v15  ;;  %v791_v51 = vadd.f32 %v788_v21, %v3230_v52  ;;  %v3453_v36 = vadd.f32 %v237_v13, %v232_v34  ;;  %v1045_v9 = vmul.f32 %v3327_v8, %v3189_v39  ;;  %v1051_v23 = vmul.f32 %v3386_v1, %v3237_v57 }
  0xdd   :  { %v231_v62 = vadd.f32 %v228_v22, %v223_v63  ;;  %2623 = vmatprep.mubr.msk.f32.mxu0 %vm3003_vm2, %v3002_v4  ;;  %v1060_v37 = vmul.f32 %v1059_v14, %v3241_v59  ;;  %v1046_v55 = vmul.f32 %v3327_v8, %v3191_v40  ;;  %v1052_v35 = vmul.f32 %v3386_v1, %v3239_v58  ;;  %s1332_s28 = smul.f32 8.333333, %s2411_s27 }
  0xde   :  { %v3461_v52 = vadd.f32 %v797_v53, %v791_v51  ;;  %v1054_v41 = vadd.f32 %v1051_v23, %v1045_v9  ;;  %v1047_v54 = vmul.f32 %v3327_v8, %v3141_v19  ;;  %v1324_v32 = vstv %s1323_s9  ;;  %s2094_s9 = smul.f32 8.333333, %s2462_s8 }
  0xdf   :  { %v3471_v45 = vadd.f32 %v236_v43, %v231_v62  ;;  %v1055_v60 = vadd.f32 %v1052_v35, %v1046_v55  ;;  %v1061_v61 = vmul.f32 %v1059_v14, %v3248_v0  ;;  %v1053_v49 = vmul.f32 %v3386_v1, %v3187_v38  ;;  %s1840_s7 = smul.f32 8.333333, %s2445_s6 }
  0xe0   :  { %v1062_v2 = vmul.f32 %v1059_v14, %v3139_v18  ;;  %v3484_v27 = vadd.f32 %v1060_v37, %v1054_v41  ;;  %v1310_v8 = vmul.f32 %v1309_v12, %v3189_v39  ;;  %v1316_v6 = vmul.f32 %v1315_v29, %v3237_v57 }
  0xe1   :  { %v1325_v42 = vmul.f32 %v1324_v32, %v3241_v59  ;;  %v3490_v44 = vadd.f32 %v1061_v61, %v1055_v60  ;;  %v1056_v17 = vadd.f32 %v1053_v49, %v1047_v54  ;;  %v1311_v1 = vmul.f32 %v1309_v12, %v3191_v40 }
  0xe2   :  { %v1317_v7 = vmul.f32 %v1315_v29, %v3239_v58  ;;  %v1319_v26 = vadd.f32 %v1316_v6, %v1310_v8  ;;  %v1326_v14 = vmul.f32 %v1324_v32, %v3248_v0  ;;  %v1563_v11 = vstv %s1562_s0 }
  0xe3   :  { %v1569_v50 = vstv %s1568_s3  ;;  %v3497_v15 = vadd.f32 %v1062_v2, %v1056_v17  ;;  %v1312_v21 = vmul.f32 %v1309_v12, %v3141_v19  ;;  %v1318_v34 = vmul.f32 %v1315_v29, %v3187_v38 }
  0xe4   :  { %v1320_v13 = vadd.f32 %v1317_v7, %v1311_v1  ;;  %v3502_v63 = vadd.f32 %v1325_v42, %v1319_v26  ;;  %v1564_v22 = vmul.f32 %v1563_v11, %v3189_v39  ;;  %v1570_v51 = vmul.f32 %v1569_v50, %v3237_v57 }
  0xe5   :  { %v1578_v53 = vstv %s1577_s14  ;;  %v1321_v62 = vadd.f32 %v1318_v34, %v1312_v21  ;;  %v1327_v9 = vmul.f32 %v1324_v32, %v3139_v18  ;;  %v1565_v29 = vmul.f32 %v1563_v11, %v3191_v40 }
  0xe6   :  { %v3506_v43 = vadd.f32 %v1326_v14, %v1320_v13  ;;  %v1579_v23 = vmul.f32 %v1578_v53, %v3241_v59  ;;  %v1573_v12 = vadd.f32 %v1570_v51, %v1564_v22  ;;  %v1571_v37 = vmul.f32 %v1569_v50, %v3239_v58 }
  0xe7   :  { %v1817_v55 = vstv %s1816_s15  ;;  %v3514_v35 = vadd.f32 %v1327_v9, %v1321_v62  ;;  %v1580_v41 = vmul.f32 %v1578_v53, %v3248_v0  ;;  %v1823_v54 = vstv %s1822_s4 }
  0xe8   :  { %v1832_v60 = vstv %s1831_s16  ;;  %v3518_v61 = vadd.f32 %v1579_v23, %v1573_v12  ;;  %v1574_v32 = vadd.f32 %v1571_v37, %v1565_v29  ;;  %v1566_v49 = vmul.f32 %v1563_v11, %v3141_v19 }
  0xe9   :  { %v1572_v2 = vmul.f32 %v1569_v50, %v3187_v38  ;;  %v1818_v8 = vmul.f32 %v1817_v55, %v3189_v39  ;;  %v1824_v6 = vmul.f32 %v1823_v54, %v3237_v57  ;;  %v1833_v42 = vmul.f32 %v1832_v60, %v3241_v59 }
  0xea   :  { %v2071_v17 = vstv %s2070_s17  ;;  %v3525_v1 = vadd.f32 %v1580_v41, %v1574_v32  ;;  %v1581_v26 = vmul.f32 %v1578_v53, %v3139_v18  ;;  %v2077_v14 = vstv %s2076_s18 }
  0xeb   :  { %v1575_v7 = vadd.f32 %v1572_v2, %v1566_v49  ;;  %v1827_v13 = vadd.f32 %v1824_v6, %v1818_v8  ;;  %v1819_v21 = vmul.f32 %v1817_v55, %v3191_v40  ;;  %v1825_v11 = vmul.f32 %v1823_v54, %v3239_v58 }
  0xec   :  { %v2086_v34 = vstv %s2085_s19  ;;  %v1834_v22 = vmul.f32 %v1832_v60, %v3248_v0  ;;  %v1820_v51 = vmul.f32 %v1817_v55, %v3141_v19  ;;  %v1826_v62 = vmul.f32 %v1823_v54, %v3187_v38 }
  0xed   :  { %v3530_v50 = vadd.f32 %v1581_v26, %v1575_v7  ;;  %v3535_v9 = vadd.f32 %v1833_v42, %v1827_v13  ;;  %v1828_v23 = vadd.f32 %v1825_v11, %v1819_v21  ;;  %v2072_v53 = vmul.f32 %v2071_v17, %v3189_v39 }
  0xee   :  { %v2078_v12 = vmul.f32 %v2077_v14, %v3237_v57  ;;  %v1829_v29 = vadd.f32 %v1826_v62, %v1820_v51  ;;  %v1835_v37 = vmul.f32 %v1832_v60, %v3139_v18  ;;  %v2087_v41 = vmul.f32 %v2086_v34, %v3241_v59 }
  0xef   :  { %v3541_v32 = vadd.f32 %v1834_v22, %v1828_v23  ;;  %v2073_v2 = vmul.f32 %v2071_v17, %v3191_v40  ;;  %v2079_v55 = vmul.f32 %v2077_v14, %v3239_v58  ;;  %v2074_v8 = vmul.f32 %v2071_v17, %v3141_v19 }
  0xf0   :  { %v2081_v49 = vadd.f32 %v2078_v12, %v2072_v53  ;;  %v3545_v54 = vadd.f32 %v1835_v37, %v1829_v29  ;;  %v2080_v39 = vmul.f32 %v2077_v14, %v3187_v38  ;;  %v2088_v60 = vmul.f32 %v2086_v34, %v3248_v0 }
  0xf1   :  { %v2082_v57 = vadd.f32 %v2079_v55, %v2073_v2  ;;  %v2089_v59 = vmul.f32 %v2086_v34, %v3139_v18 }
  0xf2   :  { %v3549_v6 = vadd.f32 %v2087_v41, %v2081_v49  ;;  %v2083_v42 = vadd.f32 %v2080_v39, %v2074_v8 }
  0xf3   :  { %v3553_v7 = vadd.f32 %v2088_v60, %v2082_v57 }
  0xf4   :  { %v3555_v26 = vadd.f32 %v2089_v59, %v2083_v42 }
 0x194   :  { %v361_v40 = vpop.f32.mrf.mxu0 }
 0x195   :  { %v375_v58 = vsel %vm82_vm0, %v361_v40, -inf }
 0x196   :  { %376 = vmax.xlane.f32.xlu0 %v375_v58  ;;  %v2580_v13 = vpop.f32.mrf.mxu0 }
 0x198   :  { %v366_v19 = vpop.f32.mrf.mxu0 }
 0x199   :  { %v378_v38 = vsel %vm82_vm0, %v366_v19, -inf }
 0x19a   :  { %379 = vmax.xlane.f32.xlu1 %v378_v38  ;;  %v2583_v17 = vpop.f32.mrf.mxu0 }
 0x19c   :  { %v371_v14 = vpop.f32.mrf.mxu0 }
 0x19d   :  { %v381_v0 = vsel %vm85_vm1, %v371_v14, -inf }
 0x19e   :  { %382 = vmax.xlane.f32.xlu0 %v381_v0  ;;  %v2586_v21 = vpop.f32.mrf.mxu0 }
 0x21f   :  { %v377_v18 = vpop.xlane.xlu0 %376 }
 0x220   :  { %v384_v11 = vsub.f32 %v361_v40, %v377_v18 }
 0x222   :  { %v387_v34 = vmul.f32 1.442695, %v384_v11 }
 0x223   :  { %v380_v22 = vpop.xlane.xlu1 %379 }
 0x224   :  { %2822 = vpow2.f32 %v387_v34  ;;  %v385_v51 = vsub.f32 %v366_v19, %v380_v22  ;;  %v217_v22 = vstv %s2340_s21 }
 0x226   :  { %v389_v62 = vmul.f32 1.442695, %v385_v51  ;;  %v538_v51 = vstv %s537_s22 }
 0x227   :  { %v383_v23 = vpop.xlane.xlu0 %382 }
 0x228   :  { %2824 = vpow2.f32 %v389_v62  ;;  %v386_v53 = vsub.f32 %v371_v14, %v383_v23  ;;  %v539_v62 = vadd.f32 %v538_v51, %v3343_v46  ;;  %v3583_v23 = vadd.f32 %v217_v22, %v3346_v28 }
 0x229   :  { %v541_v46 = vadd.f32 %v538_v51, %v3373_v31  ;;  %v3603_v28 = vadd.f32 %v217_v22, %v3392_v3 }
 0x22a   :  { %v391_v12 = vmul.f32 1.442695, %v386_v53  ;;  %v540_v53 = vadd.f32 %v538_v51, %v3360_v16  ;;  %v243_v16 = vstv %s2344_s24 }
 0x22b   :  { %v3613_v31 = vadd.f32 %v243_v16, %v3427_v20  ;;  %v3633_v20 = vadd.f32 %v243_v16, %v3471_v45 }
 0x22c   :  { %2826 = vpow2.f32 %v391_v12  ;;  %v3593_v12 = vadd.f32 %v217_v22, %v3370_v30  ;;  %v803_v30 = vstv %s802_s25 }
 0x22d   :  { %v805_v3 = vadd.f32 %v803_v30, %v3436_v25  ;;  %v1068_v25 = vstv %s1067_s26 }
 0x22e   :  { %v1071_v45 = vadd.f32 %v1068_v25, %v3497_v15 }
 0x231   :  { %v2823_v29 = vpop.eup %2822 }
 0x232   :  { %v393_v37 = vsel %vm82_vm0, %v2823_v29, 0.0 }
 0x233   :  { %394 = vadd.xlane.f32.xlu0 %v393_v37  ;;  %v3623_v37 = vadd.f32 %v243_v16, %v3453_v36  ;;  %v1069_v36 = vadd.f32 %v1068_v25, %v3484_v27  ;;  %v1333_v27 = vstv %s1332_s28 }
 0x234   :  { %v1335_v15 = vadd.f32 %v1333_v27, %v3506_v43  ;;  %v1587_v43 = vstv %s1586_s30 }
 0x235   :  { %v2825_v41 = vpop.eup %2824 }
 0x236   :  { %v396_v49 = vsel %vm82_vm0, %v2825_v41, 0.0 }
 0x237   :  { %397 = vadd.xlane.f32.xlu1 %v396_v49 }
 0x239   :  { %v2827_v2 = vpop.eup %2826 }
 0x23a   :  { %v399_v55 = vsel %vm85_vm1, %v2827_v2, 0.0 }
 0x23b   :  { %400 = vadd.xlane.f32.xlu0 %v399_v55 }
 0x2bc   :  { %v395_v8 = vpop.xlane.xlu0 %394 }
 0x2bd   :  { %2828 = vrcp.f32 %v395_v8 }
 0x2c0   :  { %v398_v39 = vpop.xlane.xlu1 %397 }
 0x2c1   :  { %2830 = vrcp.f32 %v398_v39 }
 0x2c4   :  { %v401_v57 = vpop.xlane.xlu0 %400 }
 0x2c5   :  { %2832 = vrcp.f32 %v401_v57 }
 0x2ca   :  { %v2829_v60 = vpop.eup %2828 }
 0x2cb   :  { %v405_v42 = vmul.f32 %v2829_v60, %v395_v8 }
 0x2cd   :  { %v408_v59 = vsub.f32 2.0, %v405_v42 }
 0x2ce   :  { %v2831_v40 = vpop.eup %2830 }
 0x2cf   :  { %v411_v58 = vmul.f32 %v2829_v60, %v408_v59  ;;  %v406_v13 = vmul.f32 %v2831_v40, %v398_v39 }
 0x2d1   :  { %v414_v19 = vmul.f32 %v2823_v29, %v411_v58  ;;  %v409_v38 = vsub.f32 2.0, %v406_v13  ;;  %v804_v29 = vadd.f32 %v803_v30, %v3419_v33  ;;  %v806_v33 = vadd.f32 %v803_v30, %v3461_v52 }
 0x2d2   :  { %v2833_v17 = vpop.eup %2832  ;;  %v1070_v52 = vadd.f32 %v1068_v25, %v3490_v44  ;;  %v1334_v44 = vadd.f32 %v1333_v27, %v3502_v63  ;;  %v1336_v63 = vadd.f32 %v1333_v27, %v3514_v35  ;;  %v1589_v35 = vadd.f32 %v1587_v43, %v3525_v1 }
 0x2d3   :  { %v412_v14 = vmul.f32 %v2831_v40, %v409_v38  ;;  %v407_v0 = vmul.f32 %v2833_v17, %v401_v57  ;;  %2594 = vmatmul.mubr.msk.f32.vlgmr.msra.gmra.mxu1 %vm82_vm0, %v414_v19  ;;  %v1841_v1 = vstv %s1840_s7 }
 0x2d4   :  { %2603 = vmatpush3.xpose.msk.msra.mxu1 %vm82_vm0, %v3358_v47  ;;  %2596 = vmatprep.mubr.msk.f32.mxu1 %vm3003_vm2, %v3002_v4  ;;  %v1842_v49 = vadd.f32 %v1841_v1, %v3535_v9  ;;  %v1844_v9 = vadd.f32 %v1841_v1, %v3545_v54 }
 0x2d5   :  { %v415_v21 = vmul.f32 %v2825_v41, %v412_v14  ;;  %v410_v18 = vsub.f32 2.0, %v407_v0  ;;  %2604 = vmatprep.subr.mxu1 %v3002_v4  ;;  %v1588_v41 = vadd.f32 %v1587_v43, %v3518_v61  ;;  %v1590_v61 = vadd.f32 %v1587_v43, %v3530_v50 }
 0x2d6   :  { %v1843_v50 = vadd.f32 %v1841_v1, %v3541_v32  ;;  %v2095_v32 = vstv %s2094_s9 }
 0x2d7   :  { %v413_v11 = vmul.f32 %v2833_v17, %v410_v18  ;;  %2597 = vmatmul.mubr.msk.f32.gmra.mxu1 %vm82_vm0, %v415_v21  ;;  %v2097_v55 = vadd.f32 %v2095_v32, %v3553_v7  ;;  %v2098_v54 = vadd.f32 %v2095_v32, %v3555_v26 }
 0x2d8   :  { %2605 = vmatpush3.xpose.msk.msra.mxu1 %vm82_vm0, %v3368_v48  ;;  %2599 = vmatprep.mubr.msk.f32.mxu1 %vm3003_vm2, %v3002_v4 }
 0x2d9   :  { %v416_v34 = vmul.f32 %v2827_v2, %v413_v11  ;;  %2606 = vmatprep.subr.mxu1 %v3002_v4  ;;  %v2096_v2 = vadd.f32 %v2095_v32, %v3549_v6 }
 0x2db   :  { %2600 = vmatmul.mubr.msk.f32.gmra.mxu1 %vm82_vm0, %v416_v34 }
 0x2dc   :  { %2607 = vmatpush3.xpose.msk.msra.mxu1 %vm82_vm0, %v3400_v5  ;;  %2608 = vmatprep.mubr.msk.f32.mxu1 %vm3003_vm2, %v3002_v4 }
 0x2dd   :  { %2632 = vmatprep.subr.mxu1 %v3002_v4 }
 0x2df   :  { %2609 = vmatmul.mubr.msk.f32.vlgmr.msra.gmra.mxu1 %vm82_vm0, %v539_v62 }
 0x2e0   :  { %2633 = vmatpush3.xpose.msk.msra.mxu1 %vm82_vm0, %v3583_v23  ;;  %2611 = vmatprep.mubr.msk.f32.mxu1 %vm3003_vm2, %v3002_v4 }
 0x2e1   :  { %2634 = vmatprep.subr.mxu1 %v3002_v4 }
 0x2e3   :  { %2612 = vmatmul.mubr.msk.f32.gmra.mxu1 %vm82_vm0, %v540_v53 }
 0x2e4   :  { %2635 = vmatpush3.xpose.msk.msra.mxu1 %vm82_vm0, %v3593_v12  ;;  %2614 = vmatprep.mubr.msk.f32.mxu1 %vm3003_vm2, %v3002_v4 }
 0x2e5   :  { %2636 = vmatprep.subr.mxu1 %v3002_v4 }
 0x2e7   :  { %2615 = vmatmul.mubr.msk.f32.gmra.mxu1 %vm82_vm0, %v541_v46 }
 0x2e8   :  { %2637 = vmatpush3.xpose.msk.msra.mxu1 %vm82_vm0, %v3603_v28  ;;  %2638 = vmatprep.mubr.msk.f32.mxu1 %vm3003_vm2, %v3002_v4 }
 0x2e9   :  { %2662 = vmatprep.subr.mxu1 %v3002_v4 }
 0x2eb   :  { %2639 = vmatmul.mubr.msk.f32.vlgmr.msra.gmra.mxu1 %vm82_vm0, %v804_v29 }
 0x2ec   :  { %2663 = vmatpush3.xpose.msk.msra.mxu1 %vm82_vm0, %v3613_v31  ;;  %2641 = vmatprep.mubr.msk.f32.mxu1 %vm3003_vm2, %v3002_v4 }
 0x2ed   :  { %2664 = vmatprep.subr.mxu1 %v3002_v4 }
 0x2ef   :  { %2642 = vmatmul.mubr.msk.f32.gmra.mxu1 %vm82_vm0, %v805_v3 }
 0x2f0   :  { %2665 = vmatpush3.xpose.msk.msra.mxu1 %vm82_vm0, %v3623_v37  ;;  %2644 = vmatprep.mubr.msk.f32.mxu1 %vm3003_vm2, %v3002_v4 }
 0x2f1   :  { %2666 = vmatprep.subr.mxu1 %v3002_v4 }
 0x2f3   :  { %2645 = vmatmul.mubr.msk.f32.gmra.mxu1 %vm82_vm0, %v806_v33 }
 0x2f4   :  { %2667 = vmatpush3.xpose.msk.msra.mxu1 %vm82_vm0, %v3633_v20  ;;  %2668 = vmatprep.mubr.msk.f32.mxu1 %vm3003_vm2, %v3002_v4 }
 0x2f5   :  { %2692 = vmatprep.subr.mxu1 %v3002_v4 }
 0x2f7   :  { %2669 = vmatmul.mubr.msk.f32.vlgmr.msra.gmra.mxu1 %vm82_vm0, %v1069_v36 }
 0x2f8   :  { %2693 = vmatpush3.xpose.msk.msra.mxu1 %vm82_vm0, %v3267_v10  ;;  %2671 = vmatprep.mubr.msk.f32.mxu1 %vm3003_vm2, %v3002_v4 }
 0x2f9   :  { %2694 = vmatprep.subr.mxu1 %v3002_v4 }
 0x2fb   :  { %2672 = vmatmul.mubr.msk.f32.gmra.mxu1 %vm82_vm0, %v1070_v52 }
 0x2fc   :  { %2695 = vmatpush3.xpose.msk.msra.mxu1 %vm82_vm0, %v3293_v56  ;;  %2674 = vmatprep.mubr.msk.f32.mxu1 %vm3003_vm2, %v3002_v4 }
 0x2fd   :  { %2696 = vmatprep.subr.mxu1 %v3002_v4 }
 0x2ff   :  { %2675 = vmatmul.mubr.msk.f32.gmra.mxu1 %vm82_vm0, %v1071_v45 }
 0x300   :  { %2697 = vmatpush3.xpose.msk.msra.mxu1 %vm82_vm0, %v3311_v24  ;;  %2698 = vmatprep.mubr.msk.f32.mxu1 %vm3003_vm2, %v3002_v4 }
 0x301   :  { %2722 = vmatprep.subr.mxu1 %v3002_v4 }
 0x303   :  { %2699 = vmatmul.mubr.msk.f32.vlgmr.msra.gmra.mxu1 %vm82_vm0, %v1334_v44 }
 0x304   :  { %2723 = vmatpush3.xpose.msk.msra.mxu1 %vm82_vm0, %v3358_v47  ;;  %2701 = vmatprep.mubr.msk.f32.mxu1 %vm3003_vm2, %v3002_v4 }
 0x305   :  { %2724 = vmatprep.subr.mxu1 %v3002_v4 }
 0x307   :  { %2702 = vmatmul.mubr.msk.f32.gmra.mxu1 %vm82_vm0, %v1335_v15 }
 0x308   :  { %2725 = vmatpush3.xpose.msk.msra.mxu1 %vm82_vm0, %v3368_v48  ;;  %2704 = vmatprep.mubr.msk.f32.mxu1 %vm3003_vm2, %v3002_v4 }
 0x309   :  { %2726 = vmatprep.subr.mxu1 %v3002_v4 }
 0x30b   :  { %2705 = vmatmul.mubr.msk.f32.gmra.mxu1 %vm82_vm0, %v1336_v63 }
 0x30c   :  { %2727 = vmatpush3.xpose.msk.msra.mxu1 %vm82_vm0, %v3400_v5  ;;  %2728 = vmatprep.mubr.msk.f32.mxu1 %vm3003_vm2, %v3002_v4 }
 0x30d   :  { %2752 = vmatprep.subr.mxu1 %v3002_v4 }
 0x30f   :  { %2729 = vmatmul.mubr.msk.f32.vlgmr.msra.gmra.mxu1 %vm82_vm0, %v1588_v41 }
 0x310   :  { %2753 = vmatpush3.xpose.msk.msra.mxu1 %vm82_vm0, %v3583_v23  ;;  %2731 = vmatprep.mubr.msk.f32.mxu1 %vm3003_vm2, %v3002_v4 }
 0x311   :  { %2754 = vmatprep.subr.mxu1 %v3002_v4 }
 0x313   :  { %2732 = vmatmul.mubr.msk.f32.gmra.mxu1 %vm82_vm0, %v1589_v35 }
 0x314   :  { %2755 = vmatpush3.xpose.msk.msra.mxu1 %vm82_vm0, %v3593_v12  ;;  %2734 = vmatprep.mubr.msk.f32.mxu1 %vm3003_vm2, %v3002_v4 }
 0x315   :  { %2756 = vmatprep.subr.mxu1 %v3002_v4 }
 0x317   :  { %2735 = vmatmul.mubr.msk.f32.gmra.mxu1 %vm82_vm0, %v1590_v61 }
 0x318   :  { %2757 = vmatpush3.xpose.msk.msra.mxu1 %vm82_vm0, %v3603_v28  ;;  %2758 = vmatprep.mubr.msk.f32.mxu1 %vm3003_vm2, %v3002_v4 }
 0x319   :  { %2782 = vmatprep.subr.mxu1 %v3002_v4 }
 0x31b   :  { %2759 = vmatmul.mubr.msk.f32.vlgmr.msra.gmra.mxu1 %vm82_vm0, %v1842_v49 }
 0x31c   :  { %2783 = vmatpush3.xpose.msk.msra.mxu1 %vm82_vm0, %v3613_v31  ;;  %2761 = vmatprep.mubr.msk.f32.mxu1 %vm3003_vm2, %v3002_v4 }
 0x31d   :  { %2784 = vmatprep.subr.mxu1 %v3002_v4 }
 0x31f   :  { %2762 = vmatmul.mubr.msk.f32.gmra.mxu1 %vm82_vm0, %v1843_v50 }
 0x320   :  { %2785 = vmatpush3.xpose.msk.msra.mxu1 %vm82_vm0, %v3623_v37  ;;  %2764 = vmatprep.mubr.msk.f32.mxu1 %vm3003_vm2, %v3002_v4 }
 0x321   :  { %2786 = vmatprep.subr.mxu1 %v3002_v4 }
 0x323   :  { %2765 = vmatmul.mubr.msk.f32.gmra.mxu1 %vm82_vm0, %v1844_v9 }
 0x324   :  { %2787 = vmatpush3.xpose.msk.msra.mxu1 %vm82_vm0, %v3633_v20  ;;  %2788 = vmatprep.mubr.msk.f32.mxu1 %vm3003_vm2, %v3002_v4 }
 0x327   :  { %2789 = vmatmul.mubr.msk.f32.vlgmr.msra.gmra.mxu1 %vm82_vm0, %v2096_v2 }
 0x328   :  { %2791 = vmatprep.mubr.msk.f32.mxu1 %vm3003_vm2, %v3002_v4 }
 0x32b   :  { %2792 = vmatmul.mubr.msk.f32.gmra.mxu1 %vm82_vm0, %v2097_v55 }
 0x32c   :  { %2794 = vmatprep.mubr.msk.f32.mxu1 %vm3003_vm2, %v3002_v4 }
 0x32f   :  { %2795 = vmatmul.mubr.msk.f32.gmra.mxu1 %vm82_vm0, %v2098_v54 }
 0x393   :  { %v495_v8 = vpop.f32.mrf.mxu1 }
 0x394   :  { %509 = vst.msk [vmem:[%s4147_s5] sm:$0xff] %vm82_vm0, %v495_v8 }
 0x395   :  { %v2595_v6 = vpop.f32.mrf.mxu1 }
 0x397   :  { %v500_v39 = vpop.f32.mrf.mxu1 }
 0x398   :  { %510 = vst.msk [vmem:[%s4147_s5 + $0x8] sm:$0xff] %vm82_vm0, %v500_v39 }
 0x399   :  { %v2598_v7 = vpop.f32.mrf.mxu1 }
 0x39b   :  { %v505_v57 = vpop.f32.mrf.mxu1 }
 0x39c   :  { %511 = vst.msk [vmem:[%s4147_s5 + $0x10] sm:$0x3] %vm85_vm1, %v505_v57 }
 0x39d   :  { %v2601_v26 = vpop.f32.mrf.mxu1 }
 0x39f   :  { %v3746_v60 = vpop.f32.mrf.mxu1 }
 0x3a0   :  { %v640_v42 = vsel %vm82_vm0, %v3746_v60, -inf }
 0x3a1   :  { %641 = vmax.xlane.f32.xlu1 %v640_v42  ;;  %v2610_v59 = vpop.f32.mrf.mxu1 }
 0x3a3   :  { %v3750_v40 = vpop.f32.mrf.mxu1 }
 0x3a4   :  { %v643_v58 = vsel %vm82_vm0, %v3750_v40, -inf }
 0x3a5   :  { %644 = vmax.xlane.f32.xlu0 %v643_v58  ;;  %v2613_v13 = vpop.f32.mrf.mxu1 }
 0x3a7   :  { %v3754_v19 = vpop.f32.mrf.mxu1 }
 0x3a8   :  { %v646_v38 = vsel %vm85_vm1, %v3754_v19, -inf }
 0x3a9   :  { %647 = vmax.xlane.f32.xlu1 %v646_v38  ;;  %v2616_v17 = vpop.f32.mrf.mxu1 }
 0x3ab   :  { %v3758_v14 = vpop.f32.mrf.mxu1 }
 0x3ac   :  { %v905_v0 = vsel %vm82_vm0, %v3758_v14, -inf }
 0x3ad   :  { %906 = vmax.xlane.f32.xlu0 %v905_v0  ;;  %v2640_v21 = vpop.f32.mrf.mxu1 }
 0x3af   :  { %v3762_v18 = vpop.f32.mrf.mxu1 }
 0x3b0   :  { %v908_v11 = vsel %vm82_vm0, %v3762_v18, -inf }
 0x3b1   :  { %909 = vmax.xlane.f32.xlu1 %v908_v11  ;;  %v2643_v34 = vpop.f32.mrf.mxu1 }
 0x3b3   :  { %v3766_v22 = vpop.f32.mrf.mxu1 }
 0x3b4   :  { %v911_v51 = vsel %vm85_vm1, %v3766_v22, -inf }
 0x3b5   :  { %912 = vmax.xlane.f32.xlu0 %v911_v51  ;;  %v2646_v62 = vpop.f32.mrf.mxu1 }
 0x3b7   :  { %v3770_v53 = vpop.f32.mrf.mxu1 }
 0x3b8   :  { %v1170_v46 = vsel %vm82_vm0, %v3770_v53, -inf }
 0x3b9   :  { %1171 = vmax.xlane.f32.xlu1 %v1170_v46  ;;  %v2670_v16 = vpop.f32.mrf.mxu1 }
 0x3bb   :  { %v3774_v30 = vpop.f32.mrf.mxu1 }
 0x3bc   :  { %v1173_v29 = vsel %vm82_vm0, %v3774_v30, -inf }
 0x3bd   :  { %1174 = vmax.xlane.f32.xlu0 %v1173_v29  ;;  %v2673_v3 = vpop.f32.mrf.mxu1 }
 0x3bf   :  { %v3778_v33 = vpop.f32.mrf.mxu1 }
 0x3c0   :  { %v1176_v25 = vsel %vm85_vm1, %v3778_v33, -inf }
 0x3c1   :  { %1177 = vmax.xlane.f32.xlu1 %v1176_v25  ;;  %v2676_v36 = vpop.f32.mrf.mxu1 }
 0x3c3   :  { %v3782_v52 = vpop.f32.mrf.mxu1 }
 0x3c4   :  { %v1426_v45 = vsel %vm82_vm0, %v3782_v52, -inf }
 0x3c5   :  { %1427 = vmax.xlane.f32.xlu0 %v1426_v45  ;;  %v2700_v27 = vpop.f32.mrf.mxu1 }
 0x3c7   :  { %v3786_v44 = vpop.f32.mrf.mxu1 }
 0x3c8   :  { %v1429_v15 = vsel %vm82_vm0, %v3786_v44, -inf }
 0x3c9   :  { %1430 = vmax.xlane.f32.xlu1 %v1429_v15  ;;  %v2703_v63 = vpop.f32.mrf.mxu1 }
 0x3cb   :  { %v3790_v43 = vpop.f32.mrf.mxu1 }
 0x3cc   :  { %v1432_v41 = vsel %vm85_vm1, %v3790_v43, -inf }
 0x3cd   :  { %1433 = vmax.xlane.f32.xlu0 %v1432_v41  ;;  %v2706_v35 = vpop.f32.mrf.mxu1 }
 0x3cf   :  { %v3794_v61 = vpop.f32.mrf.mxu1 }
 0x3d0   :  { %v1680_v1 = vsel %vm82_vm0, %v3794_v61, -inf }
 0x3d1   :  { %1681 = vmax.xlane.f32.xlu1 %v1680_v1  ;;  %v2730_v49 = vpop.f32.mrf.mxu1 }
 0x3d3   :  { %v3798_v50 = vpop.f32.mrf.mxu1 }
 0x3d4   :  { %v1683_v9 = vsel %vm82_vm0, %v3798_v50, -inf }
 0x3d5   :  { %1684 = vmax.xlane.f32.xlu0 %v1683_v9  ;;  %v2733_v32 = vpop.f32.mrf.mxu1 }
 0x3d7   :  { %v3802_v2 = vpop.f32.mrf.mxu1 }
 0x3d8   :  { %v1686_v55 = vsel %vm85_vm1, %v3802_v2, -inf }
 0x3d9   :  { %1687 = vmax.xlane.f32.xlu1 %v1686_v55  ;;  %v2736_v54 = vpop.f32.mrf.mxu1 }
 0x3db   :  { %v3806_v8 = vpop.f32.mrf.mxu1 }
 0x3dc   :  { %v1934_v6 = vsel %vm82_vm0, %v3806_v8, -inf }
 0x3dd   :  { %1935 = vmax.xlane.f32.xlu0 %v1934_v6  ;;  %v2760_v39 = vpop.f32.mrf.mxu1 }
 0x3df   :  { %v3810_v7 = vpop.f32.mrf.mxu1 }
 0x3e0   :  { %v1937_v57 = vsel %vm82_vm0, %v3810_v7, -inf }
 0x3e1   :  { %1938 = vmax.xlane.f32.xlu1 %v1937_v57  ;;  %v2763_v26 = vpop.f32.mrf.mxu1 }
 0x3e3   :  { %v3814_v42 = vpop.f32.mrf.mxu1 }
 0x3e4   :  { %v1940_v59 = vsel %vm85_vm1, %v3814_v42, -inf }
 0x3e5   :  { %1941 = vmax.xlane.f32.xlu0 %v1940_v59  ;;  %v2766_v58 = vpop.f32.mrf.mxu1 }
 0x3e7   :  { %v3818_v13 = vpop.f32.mrf.mxu1 }
 0x3e8   :  { %v2188_v38 = vsel %vm82_vm0, %v3818_v13, -inf }
 0x3e9   :  { %2189 = vmax.xlane.f32.xlu1 %v2188_v38  ;;  %v2790_v17 = vpop.f32.mrf.mxu1 }
 0x3eb   :  { %v3822_v0 = vpop.f32.mrf.mxu1 }
 0x3ec   :  { %v2191_v21 = vsel %vm82_vm0, %v3822_v0, -inf }
 0x3ed   :  { %2192 = vmax.xlane.f32.xlu0 %v2191_v21  ;;  %v2793_v11 = vpop.f32.mrf.mxu1 }
 0x3ef   :  { %v3826_v34 = vpop.f32.mrf.mxu1 }
 0x3f0   :  { %v2194_v51 = vsel %vm85_vm1, %v3826_v34, -inf }
 0x3f1   :  { %2195 = vmax.xlane.f32.xlu1 %v2194_v51  ;;  %v2796_v62 = vpop.f32.mrf.mxu1 }
 0x42a   :  { %v642_v46 = vpop.xlane.xlu1 %641 }
 0x42b   :  { %v649_v16 = vsub.f32 %v3746_v60, %v642_v46 }
 0x42d   :  { %v652_v29 = vmul.f32 1.442695, %v649_v16 }
 0x42e   :  { %v645_v3 = vpop.xlane.xlu0 %644 }
 0x42f   :  { %2834 = vpow2.f32 %v652_v29  ;;  %v650_v25 = vsub.f32 %v3750_v40, %v645_v3 }
 0x431   :  { %v654_v36 = vmul.f32 1.442695, %v650_v25 }
 0x432   :  { %v648_v45 = vpop.xlane.xlu1 %647 }
 0x433   :  { %2836 = vpow2.f32 %v654_v36  ;;  %v651_v27 = vsub.f32 %v3754_v19, %v648_v45 }
 0x435   :  { %v656_v15 = vmul.f32 1.442695, %v651_v27 }
 0x436   :  { %v907_v63 = vpop.xlane.xlu0 %906 }
 0x437   :  { %2838 = vpow2.f32 %v656_v15  ;;  %v914_v41 = vsub.f32 %v3758_v14, %v907_v63 }
 0x439   :  { %v917_v35 = vmul.f32 1.442695, %v914_v41 }
 0x43a   :  { %v910_v1 = vpop.xlane.xlu1 %909 }
 0x43b   :  { %2840 = vpow2.f32 %v917_v35  ;;  %v915_v60 = vsub.f32 %v3762_v18, %v910_v1 }
 0x43c   :  { %v3835_v49 = vpop.eup %2834 }
 0x43d   :  { %v919_v9 = vmul.f32 1.442695, %v915_v60  ;;  %v658_v40 = vsel %vm82_vm0, %v3835_v49, 0.0 }
 0x43e   :  { %v913_v32 = vpop.xlane.xlu0 %912  ;;  %659 = vadd.xlane.f32.xlu0 %v658_v40 }
 0x43f   :  { %2842 = vpow2.f32 %v919_v9  ;;  %v916_v19 = vsub.f32 %v3766_v22, %v913_v32 }
 0x440   :  { %v3840_v55 = vpop.eup %2836 }
 0x441   :  { %v921_v54 = vmul.f32 1.442695, %v916_v19  ;;  %v661_v14 = vsel %vm82_vm0, %v3840_v55, 0.0 }
 0x442   :  { %v1172_v6 = vpop.xlane.xlu1 %1171  ;;  %662 = vadd.xlane.f32.xlu1 %v661_v14 }
 0x443   :  { %2844 = vpow2.f32 %v921_v54  ;;  %v1179_v18 = vsub.f32 %v3770_v53, %v1172_v6 }
 0x444   :  { %v3845_v39 = vpop.eup %2838 }
 0x445   :  { %v1182_v57 = vmul.f32 1.442695, %v1179_v18  ;;  %v664_v26 = vsel %vm85_vm1, %v3845_v39, 0.0 }
 0x446   :  { %v1175_v59 = vpop.xlane.xlu0 %1174  ;;  %665 = vadd.xlane.f32.xlu0 %v664_v26 }
 0x447   :  { %2846 = vpow2.f32 %v1182_v57  ;;  %v1180_v22 = vsub.f32 %v3774_v30, %v1175_v59 }
 0x448   :  { %v3850_v58 = vpop.eup %2840 }
 0x449   :  { %v1184_v38 = vmul.f32 1.442695, %v1180_v22  ;;  %v923_v17 = vsel %vm82_vm0, %v3850_v58, 0.0 }
 0x44a   :  { %v1178_v21 = vpop.xlane.xlu1 %1177  ;;  %924 = vadd.xlane.f32.xlu1 %v923_v17 }
 0x44b   :  { %2848 = vpow2.f32 %v1184_v38  ;;  %v1181_v53 = vsub.f32 %v3778_v33, %v1178_v21 }
 0x44c   :  { %v3855_v11 = vpop.eup %2842 }
 0x44d   :  { %v1186_v51 = vmul.f32 1.442695, %v1181_v53  ;;  %v926_v62 = vsel %vm82_vm0, %v3855_v11, 0.0 }
 0x44e   :  { %v1428_v46 = vpop.xlane.xlu0 %1427  ;;  %927 = vadd.xlane.f32.xlu0 %v926_v62 }
 0x44f   :  { %2850 = vpow2.f32 %v1186_v51  ;;  %v1435_v30 = vsub.f32 %v3782_v52, %v1428_v46 }
 0x450   :  { %v3860_v16 = vpop.eup %2844 }
 0x451   :  { %v1438_v29 = vmul.f32 1.442695, %v1435_v30  ;;  %v929_v3 = vsel %vm85_vm1, %v3860_v16, 0.0 }
 0x452   :  { %v1431_v25 = vpop.xlane.xlu1 %1430  ;;  %930 = vadd.xlane.f32.xlu1 %v929_v3 }
 0x453   :  { %2852 = vpow2.f32 %v1438_v29  ;;  %v1436_v33 = vsub.f32 %v3786_v44, %v1431_v25 }
 0x454   :  { %v3865_v36 = vpop.eup %2846 }
 0x455   :  { %v1440_v45 = vmul.f32 1.442695, %v1436_v33  ;;  %v1188_v27 = vsel %vm82_vm0, %v3865_v36, 0.0 }
 0x456   :  { %v1434_v15 = vpop.xlane.xlu0 %1433  ;;  %1189 = vadd.xlane.f32.xlu0 %v1188_v27 }
 0x457   :  { %2854 = vpow2.f32 %v1440_v45  ;;  %v1437_v52 = vsub.f32 %v3790_v43, %v1434_v15 }
 0x458   :  { %v3870_v63 = vpop.eup %2848 }
 0x459   :  { %v1442_v41 = vmul.f32 1.442695, %v1437_v52  ;;  %v1191_v35 = vsel %vm82_vm0, %v3870_v63, 0.0 }
 0x45a   :  { %v1682_v1 = vpop.xlane.xlu1 %1681  ;;  %1192 = vadd.xlane.f32.xlu1 %v1191_v35 }
 0x45b   :  { %2856 = vpow2.f32 %v1442_v41  ;;  %v1689_v44 = vsub.f32 %v3794_v61, %v1682_v1 }
 0x45c   :  { %v3875_v60 = vpop.eup %2850 }
 0x45d   :  { %v1692_v9 = vmul.f32 1.442695, %v1689_v44  ;;  %v1194_v40 = vsel %vm85_vm1, %v3875_v60, 0.0 }
 0x45e   :  { %v1685_v32 = vpop.xlane.xlu0 %1684  ;;  %1195 = vadd.xlane.f32.xlu0 %v1194_v40 }
 0x45f   :  { %2858 = vpow2.f32 %v1692_v9  ;;  %v1690_v43 = vsub.f32 %v3798_v50, %v1685_v32 }
 0x460   :  { %v3880_v19 = vpop.eup %2852 }
 0x461   :  { %v1694_v54 = vmul.f32 1.442695, %v1690_v43  ;;  %v1444_v14 = vsel %vm82_vm0, %v3880_v19, 0.0 }
 0x462   :  { %v1688_v6 = vpop.xlane.xlu1 %1687  ;;  %1445 = vadd.xlane.f32.xlu1 %v1444_v14 }
 0x463   :  { %2860 = vpow2.f32 %v1694_v54  ;;  %v1691_v61 = vsub.f32 %v3802_v2, %v1688_v6 }
 0x464   :  { %v3885_v18 = vpop.eup %2854 }
 0x465   :  { %v1696_v57 = vmul.f32 1.442695, %v1691_v61  ;;  %v1447_v26 = vsel %vm82_vm0, %v3885_v18, 0.0 }
 0x466   :  { %v1936_v59 = vpop.xlane.xlu0 %1935  ;;  %1448 = vadd.xlane.f32.xlu0 %v1447_v26 }
 0x467   :  { %2862 = vpow2.f32 %v1696_v57  ;;  %v1943_v50 = vsub.f32 %v3806_v8, %v1936_v59 }
 0x468   :  { %v3890_v22 = vpop.eup %2856 }
 0x469   :  { %v1946_v38 = vmul.f32 1.442695, %v1943_v50  ;;  %v1450_v17 = vsel %vm85_vm1, %v3890_v22, 0.0 }
 0x46a   :  { %v1939_v21 = vpop.xlane.xlu1 %1938  ;;  %1451 = vadd.xlane.f32.xlu1 %v1450_v17 }
 0x46b   :  { %2864 = vpow2.f32 %v1946_v38  ;;  %v1944_v2 = vsub.f32 %v3810_v7, %v1939_v21 }
 0x46c   :  { %v3895_v53 = vpop.eup %2858 }
 0x46d   :  { %v1948_v51 = vmul.f32 1.442695, %v1944_v2  ;;  %v1698_v62 = vsel %vm82_vm0, %v3895_v53, 0.0 }
 0x46e   :  { %v1942_v46 = vpop.xlane.xlu0 %1941  ;;  %1699 = vadd.xlane.f32.xlu0 %v1698_v62 }
 0x46f   :  { %2866 = vpow2.f32 %v1948_v51  ;;  %v1945_v8 = vsub.f32 %v3814_v42, %v1942_v46 }
 0x470   :  { %v3900_v30 = vpop.eup %2860 }
 0x471   :  { %v1950_v29 = vmul.f32 1.442695, %v1945_v8  ;;  %v1701_v3 = vsel %vm82_vm0, %v3900_v30, 0.0 }
 0x472   :  { %v2190_v25 = vpop.xlane.xlu1 %2189  ;;  %1702 = vadd.xlane.f32.xlu1 %v1701_v3 }
 0x473   :  { %2868 = vpow2.f32 %v1950_v29  ;;  %v2197_v7 = vsub.f32 %v3818_v13, %v2190_v25 }
 0x474   :  { %v3905_v33 = vpop.eup %2862 }
 0x475   :  { %v2200_v45 = vmul.f32 1.442695, %v2197_v7  ;;  %v1704_v27 = vsel %vm85_vm1, %v3905_v33, 0.0 }
 0x476   :  { %1705 = vadd.xlane.f32.xlu0 %v1704_v27  ;;  %v2193_v15 = vpop.xlane.xlu0 %2192 }
 0x477   :  { %2870 = vpow2.f32 %v2200_v45  ;;  %v2198_v42 = vsub.f32 %v3822_v0, %v2193_v15 }
 0x478   :  { %v3910_v52 = vpop.eup %2864 }
 0x479   :  { %v2202_v41 = vmul.f32 1.442695, %v2198_v42  ;;  %v1952_v35 = vsel %vm82_vm0, %v3910_v52, 0.0 }
 0x47a   :  { %1953 = vadd.xlane.f32.xlu1 %v1952_v35  ;;  %v2196_v1 = vpop.xlane.xlu1 %2195 }
 0x47b   :  { %2872 = vpow2.f32 %v2202_v41  ;;  %v2199_v13 = vsub.f32 %v3826_v34, %v2196_v1 }
 0x47c   :  { %v3915_v44 = vpop.eup %2866 }
 0x47d   :  { %v2204_v9 = vmul.f32 1.442695, %v2199_v13  ;;  %v1955_v40 = vsel %vm82_vm0, %v3915_v44, 0.0 }
 0x47e   :  { %1956 = vadd.xlane.f32.xlu0 %v1955_v40 }
 0x47f   :  { %2874 = vpow2.f32 %v2204_v9 }
 0x480   :  { %v3919_v0 = vpop.eup %2868 }
 0x481   :  { %v1958_v32 = vsel %vm85_vm1, %v3919_v0, 0.0 }
 0x482   :  { %1959 = vadd.xlane.f32.xlu1 %v1958_v32 }
 0x484   :  { %v3923_v43 = vpop.eup %2870 }
 0x485   :  { %v2206_v54 = vsel %vm82_vm0, %v3923_v43, 0.0 }
 0x486   :  { %2207 = vadd.xlane.f32.xlu0 %v2206_v54 }
 0x488   :  { %v3927_v34 = vpop.eup %2872 }
 0x489   :  { %v2209_v14 = vsel %vm82_vm0, %v3927_v34, 0.0 }
 0x48a   :  { %2210 = vadd.xlane.f32.xlu1 %v2209_v14 }
 0x48c   :  { %v3931_v6 = vpop.eup %2874 }
 0x48d   :  { %v2212_v61 = vsel %vm85_vm1, %v3931_v6, 0.0 }
 0x48e   :  { %2213 = vadd.xlane.f32.xlu0 %v2212_v61 }
 0x4c7   :  { %v660_v57 = vpop.xlane.xlu0 %659 }
 0x4c8   :  { %2876 = vrcp.f32 %v660_v57 }
 0x4cb   :  { %v663_v26 = vpop.xlane.xlu1 %662 }
 0x4cc   :  { %2878 = vrcp.f32 %v663_v26 }
 0x4cf   :  { %v666_v59 = vpop.xlane.xlu0 %665 }
 0x4d0   :  { %2880 = vrcp.f32 %v666_v59 }
 0x4d3   :  { %v925_v50 = vpop.xlane.xlu1 %924 }
 0x4d4   :  { %2882 = vrcp.f32 %v925_v50 }
 0x4d5   :  { %v2877_v38 = vpop.eup %2876 }
 0x4d6   :  { %v670_v17 = vmul.f32 %v2877_v38, %v660_v57 }
 0x4d7   :  { %v928_v21 = vpop.xlane.xlu0 %927 }
 0x4d8   :  { %v673_v2 = vsub.f32 2.0, %v670_v17  ;;  %2884 = vrcp.f32 %v928_v21 }
 0x4d9   :  { %v2879_v51 = vpop.eup %2878 }
 0x4da   :  { %v676_v62 = vmul.f32 %v2877_v38, %v673_v2  ;;  %v671_v46 = vmul.f32 %v2879_v51, %v663_v26 }
 0x4db   :  { %v931_v8 = vpop.xlane.xlu1 %930 }
 0x4dc   :  { %v679_v29 = vmul.f32 %v3835_v49, %v676_v62  ;;  %v674_v3 = vsub.f32 2.0, %v671_v46  ;;  %2886 = vrcp.f32 %v931_v8 }
 0x4dd   :  { %v2881_v25 = vpop.eup %2880 }
 0x4de   :  { %v677_v7 = vmul.f32 %v2879_v51, %v674_v3  ;;  %v672_v45 = vmul.f32 %v2881_v25, %v666_v59  ;;  %2624 = vmatmul.mubr.msk.f32.vlgmr.msra.gmra.mxu0 %vm82_vm0, %v679_v29 }
 0x4df   :  { %2648 = vmatpush3.msk.msra.mxu0 %vm426_vm4, %v3583_v23  ;;  %v1190_v27 = vpop.xlane.xlu0 %1189  ;;  %2626 = vmatprep.mubr.msk.f32.mxu0 %vm3003_vm2, %v3002_v4 }
 0x4e0   :  { %v680_v15 = vmul.f32 %v3840_v55, %v677_v7  ;;  %v675_v42 = vsub.f32 2.0, %v672_v45  ;;  %2649 = vmatprep.subr.mxu0 %v3002_v4  ;;  %2888 = vrcp.f32 %v1190_v27 }
 0x4e1   :  { %v2883_v49 = vpop.eup %2882  ;;  %2650 = vmatpush3.msra.mxu0 %v3593_v12 }
 0x4e2   :  { %v678_v41 = vmul.f32 %v2881_v25, %v675_v42  ;;  %v935_v35 = vmul.f32 %v2883_v49, %v925_v50  ;;  %2651 = vmatprep.subr.mxu0 %v3002_v4  ;;  %2627 = vmatmul.mubr.msk.f32.gmra.mxu0 %vm82_vm0, %v680_v15 }
 0x4e3   :  { %2652 = vmatpush3.msra.mxu0 %v3603_v28  ;;  %v1193_v1 = vpop.xlane.xlu1 %1192  ;;  %2629 = vmatprep.mubr.msk.f32.mxu0 %vm3003_vm2, %v3002_v4 }
 0x4e4   :  { %v681_v55 = vmul.f32 %v3845_v39, %v678_v41  ;;  %v938_v13 = vsub.f32 2.0, %v935_v35  ;;  %2890 = vrcp.f32 %v1193_v1  ;;  %2677 = vmatprep.subr.mxu0 %v3002_v4 }
 0x4e5   :  { %v2885_v9 = vpop.eup %2884 }
 0x4e6   :  { %v941_v40 = vmul.f32 %v2883_v49, %v938_v13  ;;  %v936_v32 = vmul.f32 %v2885_v9, %v928_v21  ;;  %2630 = vmatmul.mubr.msk.f32.gmra.mxu0 %vm82_vm0, %v681_v55 }
 0x4e7   :  { %v1196_v54 = vpop.xlane.xlu0 %1195  ;;  %2653 = vmatprep.mubr.msk.f32.mxu0 %vm3003_vm2, %v3002_v4 }
 0x4e8   :  { %v944_v14 = vmul.f32 %v3850_v58, %v941_v40  ;;  %v939_v61 = vsub.f32 2.0, %v936_v32  ;;  %2892 = vrcp.f32 %v1196_v54 }
 0x4e9   :  { %v2887_v57 = vpop.eup %2886 }
 0x4ea   :  { %v942_v26 = vmul.f32 %v2885_v9, %v939_v61  ;;  %v937_v39 = vmul.f32 %v2887_v57, %v931_v8  ;;  %2654 = vmatmul.mubr.msk.f32.vlgmr.msra.gmra.mxu0 %vm82_vm0, %v944_v14 }
 0x4eb   :  { %2678 = vmatpush3.msk.msra.mxu0 %vm426_vm4, %v3613_v31  ;;  %v1446_v59 = vpop.xlane.xlu1 %1445  ;;  %2656 = vmatprep.mubr.msk.f32.mxu0 %vm3003_vm2, %v3002_v4 }
 0x4ec   :  { %v945_v50 = vmul.f32 %v3855_v11, %v942_v26  ;;  %v940_v38 = vsub.f32 2.0, %v937_v39  ;;  %2679 = vmatprep.subr.mxu0 %v3002_v4  ;;  %2894 = vrcp.f32 %v1446_v59 }
 0x4ed   :  { %v2889_v58 = vpop.eup %2888  ;;  %2680 = vmatpush3.msra.mxu0 %v3623_v37 }
 0x4ee   :  { %v943_v17 = vmul.f32 %v2887_v57, %v940_v38  ;;  %v1200_v21 = vmul.f32 %v2889_v58, %v1190_v27  ;;  %2681 = vmatprep.subr.mxu0 %v3002_v4  ;;  %2657 = vmatmul.mubr.msk.f32.gmra.mxu0 %vm82_vm0, %v945_v50 }
 0x4ef   :  { %2682 = vmatpush3.msra.mxu0 %v3633_v20  ;;  %v1449_v2 = vpop.xlane.xlu0 %1448  ;;  %2659 = vmatprep.mubr.msk.f32.mxu0 %vm3003_vm2, %v3002_v4 }
 0x4f0   :  { %v946_v11 = vmul.f32 %v3860_v16, %v943_v17  ;;  %v1203_v51 = vsub.f32 2.0, %v1200_v21  ;;  %2896 = vrcp.f32 %v1449_v2  ;;  %2707 = vmatprep.subr.mxu0 %v3002_v4 }
 0x4f1   :  { %v2891_v62 = vpop.eup %2890 }
 0x4f2   :  { %v1206_v46 = vmul.f32 %v2889_v58, %v1203_v51  ;;  %v1201_v8 = vmul.f32 %v2891_v62, %v1193_v1  ;;  %2660 = vmatmul.mubr.msk.f32.gmra.mxu0 %vm82_vm0, %v946_v11 }
 0x4f3   :  { %v1452_v29 = vpop.xlane.xlu1 %1451  ;;  %2683 = vmatprep.mubr.msk.f32.mxu0 %vm3003_vm2, %v3002_v4 }
 0x4f4   :  { %v1209_v3 = vmul.f32 %v3865_v36, %v1206_v46  ;;  %v1204_v25 = vsub.f32 2.0, %v1201_v8  ;;  %2898 = vrcp.f32 %v1452_v29 }
 0x4f5   :  { %v2893_v7 = vpop.eup %2892 }
 0x4f6   :  { %v1207_v45 = vmul.f32 %v2891_v62, %v1204_v25  ;;  %v1202_v16 = vmul.f32 %v2893_v7, %v1196_v54  ;;  %2684 = vmatmul.mubr.msk.f32.vlgmr.msra.gmra.mxu0 %vm82_vm0, %v1209_v3 }
 0x4f7   :  { %2708 = vmatpush3.msk.msra.mxu0 %vm426_vm4, %v3267_v10  ;;  %v1700_v27 = vpop.xlane.xlu0 %1699  ;;  %2686 = vmatprep.mubr.msk.f32.mxu0 %vm3003_vm2, %v3002_v4 }
 0x4f8   :  { %v1210_v15 = vmul.f32 %v3870_v63, %v1207_v45  ;;  %v1205_v42 = vsub.f32 2.0, %v1202_v16  ;;  %2900 = vrcp.f32 %v1700_v27  ;;  %2709 = vmatprep.subr.mxu0 %v3002_v4 }
 0x4f9   :  { %v2895_v36 = vpop.eup %2894  ;;  %2710 = vmatpush3.msra.mxu0 %v3293_v56 }
 0x4fa   :  { %v1208_v49 = vmul.f32 %v2893_v7, %v1205_v42  ;;  %v1456_v41 = vmul.f32 %v2895_v36, %v1446_v59  ;;  %2711 = vmatprep.subr.mxu0 %v3002_v4  ;;  %2687 = vmatmul.mubr.msk.f32.gmra.mxu0 %vm82_vm0, %v1210_v15 }
 0x4fb   :  { %2712 = vmatpush3.msra.mxu0 %v3311_v24  ;;  %v1703_v10 = vpop.xlane.xlu1 %1702  ;;  %2689 = vmatprep.mubr.msk.f32.mxu0 %vm3003_vm2, %v3002_v4 }
 0x4fc   :  { %v1211_v63 = vmul.f32 %v3875_v60, %v1208_v49  ;;  %v1459_v35 = vsub.f32 2.0, %v1456_v41  ;;  %2902 = vrcp.f32 %v1703_v10  ;;  %2737 = vmatprep.subr.mxu0 %v3002_v4 }
 0x4fd   :  { %v2897_v1 = vpop.eup %2896 }
 0x4fe   :  { %v1462_v56 = vmul.f32 %v2895_v36, %v1459_v35  ;;  %v1457_v55 = vmul.f32 %v2897_v1, %v1449_v2  ;;  %2690 = vmatmul.mubr.msk.f32.gmra.mxu0 %vm82_vm0, %v1211_v63 }
 0x4ff   :  { %v1706_v13 = vpop.xlane.xlu0 %1705  ;;  %2713 = vmatprep.mubr.msk.f32.mxu0 %vm3003_vm2, %v3002_v4 }
 0x500   :  { %v1465_v24 = vmul.f32 %v3880_v19, %v1462_v56  ;;  %v1460_v9 = vsub.f32 2.0, %v1457_v55  ;;  %2904 = vrcp.f32 %v1706_v13 }
 0x501   :  { %v2899_v40 = vpop.eup %2898 }
 0x502   :  { %v1463_v32 = vmul.f32 %v2897_v1, %v1460_v9  ;;  %v1458_v60 = vmul.f32 %v2899_v40, %v1452_v29  ;;  %2714 = vmatmul.mubr.msk.f32.vlgmr.msra.gmra.mxu0 %vm82_vm0, %v1465_v24 }
 0x503   :  { %2738 = vmatpush3.msk.msra.mxu0 %vm426_vm4, %v3358_v47  ;;  %v1954_v54 = vpop.xlane.xlu1 %1953  ;;  %2716 = vmatprep.mubr.msk.f32.mxu0 %vm3003_vm2, %v3002_v4 }
 0x504   :  { %v1466_v14 = vmul.f32 %v3885_v18, %v1463_v32  ;;  %v1461_v61 = vsub.f32 2.0, %v1458_v60  ;;  %2739 = vmatprep.subr.mxu0 %v3002_v4  ;;  %2906 = vrcp.f32 %v1954_v54 }
 0x505   :  { %v2901_v19 = vpop.eup %2900  ;;  %2740 = vmatpush3.msra.mxu0 %v3368_v48 }
 0x506   :  { %v1464_v57 = vmul.f32 %v2899_v40, %v1461_v61  ;;  %v1710_v26 = vmul.f32 %v2901_v19, %v1700_v27  ;;  %2741 = vmatprep.subr.mxu0 %v3002_v4  ;;  %2717 = vmatmul.mubr.msk.f32.gmra.mxu0 %vm82_vm0, %v1466_v14 }
 0x507   :  { %2742 = vmatpush3.msra.mxu0 %v3400_v5  ;;  %v1957_v47 = vpop.xlane.xlu0 %1956  ;;  %2719 = vmatprep.mubr.msk.f32.mxu0 %vm3003_vm2, %v3002_v4 }
 0x508   :  { %v1467_v18 = vmul.f32 %v3890_v22, %v1464_v57  ;;  %v1713_v39 = vsub.f32 2.0, %v1710_v26  ;;  %2908 = vrcp.f32 %v1957_v47  ;;  %2767 = vmatprep.subr.mxu0 %v3002_v4 }
 0x509   :  { %v2903_v59 = vpop.eup %2902 }
 0x50a   :  { %v1716_v48 = vmul.f32 %v2901_v19, %v1713_v39  ;;  %v1711_v50 = vmul.f32 %v2903_v59, %v1703_v10  ;;  %2720 = vmatmul.mubr.msk.f32.gmra.mxu0 %vm82_vm0, %v1467_v18 }
 0x50b   :  { %v1960_v38 = vpop.xlane.xlu1 %1959  ;;  %2743 = vmatprep.mubr.msk.f32.mxu0 %vm3003_vm2, %v3002_v4 }
 0x50c   :  { %v1719_v5 = vmul.f32 %v3895_v53, %v1716_v48  ;;  %v1714_v58 = vsub.f32 2.0, %v1711_v50  ;;  %2910 = vrcp.f32 %v1960_v38 }
 0x50d   :  { %v2905_v17 = vpop.eup %2904 }
 0x50e   :  { %v1717_v21 = vmul.f32 %v2903_v59, %v1714_v58  ;;  %v1712_v22 = vmul.f32 %v2905_v17, %v1706_v13  ;;  %2744 = vmatmul.mubr.msk.f32.vlgmr.msra.gmra.mxu0 %vm82_vm0, %v1719_v5 }
 0x50f   :  { %2768 = vmatpush3.msk.msra.mxu0 %vm426_vm4, %v3583_v23  ;;  %v2208_v2 = vpop.xlane.xlu0 %2207  ;;  %2746 = vmatprep.mubr.msk.f32.mxu0 %vm3003_vm2, %v3002_v4 }
 0x510   :  { %v1720_v11 = vmul.f32 %v3900_v30, %v1717_v21  ;;  %v1715_v51 = vsub.f32 2.0, %v1712_v22  ;;  %2912 = vrcp.f32 %v2208_v2  ;;  %2769 = vmatprep.subr.mxu0 %v3002_v4 }
 0x511   :  { %v2907_v53 = vpop.eup %2906  ;;  %2770 = vmatpush3.msra.mxu0 %v3593_v12 }
 0x512   :  { %v1718_v62 = vmul.f32 %v2905_v17, %v1715_v51  ;;  %v1964_v46 = vmul.f32 %v2907_v53, %v1954_v54  ;;  %2771 = vmatprep.subr.mxu0 %v3002_v4  ;;  %2747 = vmatmul.mubr.msk.f32.gmra.mxu0 %vm82_vm0, %v1720_v11 }
 0x513   :  { %2772 = vmatpush3.msra.mxu0 %v3603_v28  ;;  %v2211_v23 = vpop.xlane.xlu1 %2210  ;;  %2749 = vmatprep.mubr.msk.f32.mxu0 %vm3003_vm2, %v3002_v4 }
 0x514   :  { %v1721_v30 = vmul.f32 %v3905_v33, %v1718_v62  ;;  %v1967_v8 = vsub.f32 2.0, %v1964_v46  ;;  %2914 = vrcp.f32 %v2211_v23  ;;  %2797 = vmatprep.subr.mxu0 %v3002_v4 }
 0x515   :  { %v2909_v29 = vpop.eup %2908 }
 0x516   :  { %v1970_v12 = vmul.f32 %v2907_v53, %v1967_v8  ;;  %v1965_v3 = vmul.f32 %v2909_v29, %v1957_v47  ;;  %2750 = vmatmul.mubr.msk.f32.gmra.mxu0 %vm82_vm0, %v1721_v30 }
 0x517   :  { %v2214_v25 = vpop.xlane.xlu0 %2213  ;;  %2773 = vmatprep.mubr.msk.f32.mxu0 %vm3003_vm2, %v3002_v4 }
 0x518   :  { %v1973_v28 = vmul.f32 %v3910_v52, %v1970_v12  ;;  %v1968_v7 = vsub.f32 2.0, %v1965_v3  ;;  %2916 = vrcp.f32 %v2214_v25 }
 0x519   :  { %v2911_v45 = vpop.eup %2910 }
 0x51a   :  { %v1971_v16 = vmul.f32 %v2909_v29, %v1968_v7  ;;  %v1966_v33 = vmul.f32 %v2911_v45, %v1960_v38  ;;  %2774 = vmatmul.mubr.msk.f32.vlgmr.msra.gmra.mxu0 %vm82_vm0, %v1973_v28 }
 0x51b   :  { %2798 = vmatpush3.msk.msra.mxu0 %vm426_vm4, %v3613_v31  ;;  %2776 = vmatprep.mubr.msk.f32.mxu0 %vm3003_vm2, %v3002_v4 }
 0x51c   :  { %v1974_v27 = vmul.f32 %v3915_v44, %v1971_v16  ;;  %v1969_v15 = vsub.f32 2.0, %v1966_v33  ;;  %2799 = vmatprep.subr.mxu0 %v3002_v4 }
 0x51d   :  { %v2913_v42 = vpop.eup %2912  ;;  %2800 = vmatpush3.msra.mxu0 %v3623_v37 }
 0x51e   :  { %v1972_v52 = vmul.f32 %v2911_v45, %v1969_v15  ;;  %v2218_v36 = vmul.f32 %v2913_v42, %v2208_v2  ;;  %2801 = vmatprep.subr.mxu0 %v3002_v4  ;;  %2777 = vmatmul.mubr.msk.f32.gmra.mxu0 %vm82_vm0, %v1974_v27 }
 0x51f   :  { %2802 = vmatpush3.msra.mxu0 %v3633_v20  ;;  %2779 = vmatprep.mubr.msk.f32.mxu0 %vm3003_vm2, %v3002_v4 }
 0x520   :  { %v1975_v31 = vmul.f32 %v3919_v0, %v1972_v52  ;;  %v2221_v44 = vsub.f32 2.0, %v2218_v36 }
 0x521   :  { %v2915_v49 = vpop.eup %2914 }
 0x522   :  { %v2224_v41 = vmul.f32 %v2913_v42, %v2221_v44  ;;  %v2219_v10 = vmul.f32 %v2915_v49, %v2211_v23  ;;  %2780 = vmatmul.mubr.msk.f32.gmra.mxu0 %vm82_vm0, %v1975_v31 }
 0x523   :  { %2803 = vmatprep.mubr.msk.f32.mxu0 %vm3003_vm2, %v3002_v4 }
 0x524   :  { %v2227_v37 = vmul.f32 %v3923_v43, %v2224_v41  ;;  %v2222_v63 = vsub.f32 2.0, %v2219_v10 }
 0x525   :  { %v2917_v35 = vpop.eup %2916 }
 0x526   :  { %v2225_v1 = vmul.f32 %v2915_v49, %v2222_v63  ;;  %v2220_v20 = vmul.f32 %v2917_v35, %v2214_v25  ;;  %2804 = vmatmul.mubr.msk.f32.vlgmr.msra.gmra.mxu0 %vm82_vm0, %v2227_v37 }
 0x527   :  { %2806 = vmatprep.mubr.msk.f32.mxu0 %vm3003_vm2, %v3002_v4 }
 0x528   :  { %v2228_v0 = vmul.f32 %v3927_v34, %v2225_v1  ;;  %v2223_v56 = vsub.f32 2.0, %v2220_v20 }
 0x52a   :  { %v2226_v55 = vmul.f32 %v2917_v35, %v2223_v56  ;;  %2807 = vmatmul.mubr.msk.f32.gmra.mxu0 %vm82_vm0, %v2228_v0 }
 0x52b   :  { %2809 = vmatprep.mubr.msk.f32.mxu0 %vm3003_vm2, %v3002_v4 }
 0x52c   :  { %v2229_v43 = vmul.f32 %v3931_v6, %v2226_v55 }
 0x52e   :  { %2810 = vmatmul.mubr.msk.f32.gmra.mxu0 %vm82_vm0, %v2229_v43 }
 0x59e   :  { %v759_v13 = vpop.f32.mrf.mxu0 }
 0x59f   :  { %2371 = vst.msk [vmem:[%s4147_s5 + $0x18] sm:$0xff] %vm82_vm0, %v759_v13 }
 0x5a0   :  { %v2625_v24 = vpop.f32.mrf.mxu0 }
 0x5a2   :  { %v764_v9 = vpop.f32.mrf.mxu0 }
 0x5a3   :  { %2372 = vst.msk [vmem:[%s4147_s5 + $0x20] sm:$0xff] %vm82_vm0, %v764_v9 }
 0x5a4   :  { %v2628_v34 = vpop.f32.mrf.mxu0 }
 0x5a6   :  { %v769_v40 = vpop.f32.mrf.mxu0 }
 0x5a7   :  { %2373 = vst.msk [vmem:[%s4147_s5 + $0x28] sm:$0x3] %vm85_vm1, %v769_v40 }
 0x5a8   :  { %v2631_v4 = vpop.f32.mrf.mxu0 }
 0x5aa   :  { %v1024_v6 = vpop.f32.mrf.mxu0 }
 0x5ab   :  { %2388 = vst.msk [vmem:[%s4147_s5 + $0x30] sm:$0xff] %vm82_vm0, %v1024_v6 }
 0x5ac   :  { %v2655_v32 = vpop.f32.mrf.mxu0 }
 0x5ae   :  { %v1029_v60 = vpop.f32.mrf.mxu0 }
 0x5af   :  { %2389 = vst.msk [vmem:[%s4147_s5 + $0x38] sm:$0xff] %vm82_vm0, %v1029_v60 }
 0x5b0   :  { %v2658_v54 = vpop.f32.mrf.mxu0 }
 0x5b2   :  { %v1034_v14 = vpop.f32.mrf.mxu0 }
 0x5b3   :  { %2390 = vst.msk [vmem:[%s4147_s5 + $0x40] sm:$0x3] %vm85_vm1, %v1034_v14 }
 0x5b4   :  { %v2661_v61 = vpop.f32.mrf.mxu0 }
 0x5b6   :  { %v1289_v19 = vpop.f32.mrf.mxu0 }
 0x5b7   :  { %2405 = vst.msk [vmem:[%s4147_s5 + $0x48] sm:$0xff] %vm82_vm0, %v1289_v19 }
 0x5b8   :  { %v2685_v57 = vpop.f32.mrf.mxu0 }
 0x5ba   :  { %v1294_v26 = vpop.f32.mrf.mxu0 }
 0x5bb   :  { %2406 = vst.msk [vmem:[%s4147_s5 + $0x50] sm:$0xff] %vm82_vm0, %v1294_v26 }
 0x5bc   :  { %v2688_v47 = vpop.f32.mrf.mxu0 }
 0x5be   :  { %v1299_v18 = vpop.f32.mrf.mxu0 }
 0x5bf   :  { %2407 = vst.msk [vmem:[%s4147_s5 + $0x58] sm:$0x3] %vm85_vm1, %v1299_v18 }
 0x5c0   :  { %v2691_v39 = vpop.f32.mrf.mxu0 }
 0x5c2   :  { %v1543_v59 = vpop.f32.mrf.mxu0 }
 0x5c3   :  { %2422 = vst.msk [vmem:[%s4147_s5 + $0x60] sm:$0xff] %vm82_vm0, %v1543_v59 }
 0x5c4   :  { %v2715_v48 = vpop.f32.mrf.mxu0 }
 0x5c6   :  { %v1548_v50 = vpop.f32.mrf.mxu0 }
 0x5c7   :  { %2423 = vst.msk [vmem:[%s4147_s5 + $0x68] sm:$0xff] %vm82_vm0, %v1548_v50 }
 0x5c8   :  { %v2718_v38 = vpop.f32.mrf.mxu0 }
 0x5ca   :  { %v1553_v5 = vpop.f32.mrf.mxu0 }
 0x5cb   :  { %2424 = vst.msk [vmem:[%s4147_s5 + $0x70] sm:$0x3] %vm85_vm1, %v1553_v5 }
 0x5cc   :  { %v2721_v58 = vpop.f32.mrf.mxu0 }
 0x5ce   :  { %v1797_v17 = vpop.f32.mrf.mxu0 }
 0x5cf   :  { %2439 = vst.msk [vmem:[%s4147_s5 + $0x78] sm:$0xff] %vm82_vm0, %v1797_v17 }
 0x5d0   :  { %v2745_v21 = vpop.f32.mrf.mxu0 }
 0x5d2   :  { %v1802_v22 = vpop.f32.mrf.mxu0 }
 0x5d3   :  { %2440 = vst.msk [vmem:[%s4147_s5 + $0x80] sm:$0xff] %vm82_vm0, %v1802_v22 }
 0x5d4   :  { %v2748_v2 = vpop.f32.mrf.mxu0 }
 0x5d6   :  { %v1807_v11 = vpop.f32.mrf.mxu0 }
 0x5d7   :  { %2441 = vst.msk [vmem:[%s4147_s5 + $0x88] sm:$0x3] %vm85_vm1, %v1807_v11 }
 0x5d8   :  { %v2751_v51 = vpop.f32.mrf.mxu0 }
 0x5da   :  { %v2051_v53 = vpop.f32.mrf.mxu0 }
 0x5db   :  { %2456 = vst.msk [vmem:[%s4147_s5 + $0x90] sm:$0xff] %vm82_vm0, %v2051_v53 }
 0x5dc   :  { %v2775_v62 = vpop.f32.mrf.mxu0 }
 0x5de   :  { %v2056_v46 = vpop.f32.mrf.mxu0 }
 0x5df   :  { %2457 = vst.msk [vmem:[%s4147_s5 + $0x98] sm:$0xff] %vm82_vm0, %v2056_v46 }
 0x5e0   :  { %v2778_v23 = vpop.f32.mrf.mxu0 }
 0x5e2   :  { %v2061_v30 = vpop.f32.mrf.mxu0 }
 0x5e3   :  { %2458 = vst.msk [vmem:[%s4147_s5 + $0xa0] sm:$0x3] %vm85_vm1, %v2061_v30 }
 0x5e4   :  { %v2781_v8 = vpop.f32.mrf.mxu0 }
 0x5e6   :  { %v2305_v29 = vpop.f32.mrf.mxu0 }
 0x5e7   :  { %2473 = vst.msk [vmem:[%s4147_s5 + $0xa8] sm:$0xff] %vm82_vm0, %v2305_v29 }
 0x5e8   :  { %v2805_v12 = vpop.f32.mrf.mxu0 }
 0x5ea   :  { %v2310_v3 = vpop.f32.mrf.mxu0 }
 0x5eb   :  { %2474 = vst.msk [vmem:[%s4147_s5 + $0xb0] sm:$0xff] %vm82_vm0, %v2310_v3 }
 0x5ec   :  { %v2808_v25 = vpop.f32.mrf.mxu0 }
 0x5ee   :  { %v2315_v28 = vpop.f32.mrf.mxu0 }
 0x5ef   :  { %2475 = vst.msk [vmem:[%s4147_s5 + $0xb8] sm:$0x3] %vm85_vm1, %v2315_v28 }
 0x5f0   :  { %v2811_v7 = vpop.f32.mrf.mxu0 }
 0x5f1   :  { %2327 = vsyncpa [#allocation4], 1 }
 0x5f2   :  { %2328 = vsyncpa [#allocation5], 1 }
 0x5f3   :  { %2329 = vsyncpa [#allocation8], 1 }
 0x5f4   :  { %2330 = vsyncpa [#allocation11], 1 }

</bundles_post_ra>
